<compile_context>
chip_gen: v5e
topology: v5e:2x2
jax: 0.10.0
libtpu: 0.0.40
codegen_flags: <defaults>
</compile_context>

<pallas_src>
import jax
import jax.numpy as jnp
from jax import lax
from jax.experimental import pallas as pl
from jax.experimental.pallas import tpu as pltpu


def _make_kernel(B, Ho, Wo, Hp, Wp, C1, C2, C2p):
    Ho_e, Wo_e = 2 * Hp, 2 * Wp          # even-padded conv-output extents for the pool
    M = B * Ho * Wo                      # matmul rows (batch folded into M)

    def kernel(x_ref, w_ref, b_ref, o_ref, lhs_ref, conv_ref, pool_ref):
        # x_ref:    (B, 4, Hq, Wq, C1) bf16  parity quadrants [ee, eo, oe, oo]
        # w_ref:    (9*C1, C2p)        bf16  BN-folded conv weights, rows = tap*C1 + c1
        # b_ref:    (1, C2p)           f32   BN-folded bias
        # o_ref:    (B, Hp, Wp, C2)    f32   pooled output (unpadded channels)
        # lhs_ref:  (M, 9*C1)          bf16  in-VMEM im2col LHS
        # conv_ref: (B, Ho_e, Wo_e, C2p) f32 conv output, pre-padded for the H/W pool
        # pool_ref: (B, Hp, Wo_e+1, C2p) f32 H-pooled rows, column 0 = zero left pad

        # ---- in-VMEM im2col: 9 lazy tap loads, 9 sub-stores (tap-major / c1-minor cols) ----
        for kh in range(3):
            for kw in range(3):
                q = (kh % 2) * 2 + (kw % 2)
                dh, dw = kh // 2, kw // 2
                tap = x_ref[:, q, dh:dh + Ho, dw:dw + Wo, :]        # (B, Ho, Wo, C1)
                # Free reshape (Wo is a multiple of 8 here; pick W blocks accordingly
                # at production sizes so this stays a pure re-addressing).
                lhs_ref[:, (kh * 3 + kw) * C1:(kh * 3 + kw + 1) * C1] = tap.reshape(M, C1)

        # ---- ONE fused MXU dot, K = 9*C1; accumulation stays inside the MXU ----
        acc = jnp.dot(lhs_ref[...], w_ref[...], preferred_element_type=jnp.float32)

        # Folded BatchNorm bias + ReLU.
        y = jnp.maximum(acc + b_ref[...], 0.0)                      # (M, C2p) f32

        # ---- conv output into the pre-padded scratch (zero pad == -inf pad post-ReLU) ----
        if Ho_e > Ho:
            conv_ref[:, Ho:, :, :] = jnp.zeros((B, Ho_e - Ho, Wo_e, C2p), jnp.float32)
        if Wo_e > Wo:
            conv_ref[:, :Ho, Wo:, :] = jnp.zeros((B, Ho, Wo_e - Wo, C2p), jnp.float32)
        conv_ref[:, :Ho, :Wo, :] = y.reshape(B, Ho, Wo, C2p)

        # ---- MaxPool(3, stride 2, pad 1), separable and fully vectorized ----
        # H direction (major dims): out_h[i] = max(row 2i-1, row 2i, row 2i+1).
        yv = conv_ref[...].reshape(B, Hp, 2, Wo_e, C2p)
        r_even = yv[:, :, 0]                                        # rows 2i
        r_odd = yv[:, :, 1]                                         # rows 2i+1
        if Hp > 1:
            r_prev = jnp.concatenate(                               # rows 2i-1 (zero for i=0)
                [jnp.zeros((B, 1, Wo_e, C2p), jnp.float32), r_odd[:, :Hp - 1]], axis=1)
        else:
            r_prev = jnp.zeros((B, Hp, Wo_e, C2p), jnp.float32)

        pool_ref[:, :, 0:1, :] = jnp.zeros((B, Hp, 1, C2p), jnp.float32)   # left pad col
        pool_ref[:, :, 1:, :] = jnp.maximum(jnp.maximum(r_even, r_odd), r_prev)

        # W direction: three stride-2 sublane loads off the padded scratch.
        c_prev = pool_ref[:, :, pl.ds(0, Wp, stride=2), :]          # cols 2j-1 (pad col for j=0)
        c_cent = pool_ref[:, :, pl.ds(1, Wp, stride=2), :]          # cols 2j
        c_next = pool_ref[:, :, pl.ds(2, Wp, stride=2), :]          # cols 2j+1
        pooled = jnp.maximum(jnp.maximum(c_cent, c_next), c_prev)   # (B, Hp, Wp, C2p)

        # Single store of the real channels only (cuts HBM writeback ~C2p/C2 = 16x here).
        o_ref[...] = pooled[..., :C2]

    return kernel


def bmconv_forward(x_nchw, w_oihw, gamma, beta, run_mean, run_var, eps=1e-5):
    N, C1, Hi, Wi = x_nchw.shape
    C2 = w_oihw.shape[0]
    Ho = (Hi - 1) // 2 + 1                      # conv(3, s=2, p=1) output height
    Wo = (Wi - 1) // 2 + 1
    Hp = (Ho - 1) // 2 + 1                      # maxpool(3, s=2, p=1) output height
    Wp = (Wo - 1) // 2 + 1
    Hq, Wq = Ho + 1, Wo + 1                     # parity-quadrant spatial extents
    C2p = ((C2 + 127) // 128) * 128             # lane-padded channels for MXU/scratches only
    K9 = 9 * C1

    # Images per grid step: fold batch into the matmul M dim, targeting M up to ~512 rows.
    B = max(1, min(N, 512 // max(1, Ho * Wo)))
    Npad = -(-N // B) * B
    num_steps = Npad // B

    # ---- JAX-side layout plumbing (pure layout ops; XLA fuses them into one copy) ----
    x = jnp.transpose(x_nchw, (0, 2, 3, 1)).astype(jnp.float32)          # NHWC
    # Conv zero-pad of 1 on the low side; extra high-side pad so every parity quadrant has
    # the same (Hq, Wq) spatial shape.
    x_pad = jnp.pad(x, ((0, 0), (1, 2 * Ho + 1 - Hi), (1, 2 * Wo + 1 - Wi), (0, 0)))
    quads = jnp.stack(
        [x_pad[:, p::2, q::2, :] for p in (0, 1) for q in (0, 1)], axis=1
    ).astype(jnp.bfloat16)                                               # (N,4,Hq,Wq,C1)
    if Npad > N:
        quads = jnp.pad(quads, ((0, Npad - N), (0, 0), (0, 0), (0, 0), (0, 0)))

    # Fold eval-mode BatchNorm into the conv weight / bias; single (9*C1, C2p) RHS slab.
    scale = gamma / jnp.sqrt(run_var + eps)                              # (C2,)
    w_taps = jnp.transpose(w_oihw, (2, 3, 1, 0)).reshape(9, C1, C2)      # (kh*3+kw, C1, C2)
    w_eff = (w_taps * scale[None, None, :]).astype(jnp.bfloat16).reshape(K9, C2)
    w_eff = jnp.pad(w_eff, ((0, 0), (0, C2p - C2)))                      # (9*C1, C2p)
    b_eff = jnp.pad(beta - run_mean * scale, (0, C2p - C2))
    b_eff = b_eff.reshape(1, C2p).astype(jnp.float32)

    x_spec = pl.BlockSpec((B, 4, Hq, Wq, C1), lambda b: (b, 0, 0, 0, 0))
    if num_steps > 2:
        # Deeper input buffering only pays when the grid actually pipelines multiple steps.
        x_spec = pl.BlockSpec((B, 4, Hq, Wq, C1), lambda b: (b, 0, 0, 0, 0),
                              pipeline_mode=pl.Buffered(3))

    out = pl.pallas_call(
        _make_kernel(B, Ho, Wo, Hp, Wp, C1, C2, C2p),
        out_shape=jax.ShapeDtypeStruct((Npad, Hp, Wp, C2), jnp.float32),
        grid_spec=pltpu.PrefetchScalarGridSpec(
            num_scalar_prefetch=0,
            grid=(num_steps,),
            in_specs=[
                x_spec,
                pl.BlockSpec((K9, C2p), lambda b: (0, 0)),
                pl.BlockSpec((1, C2p), lambda b: (0, 0)),
            ],
            out_specs=pl.BlockSpec((B, Hp, Wp, C2), lambda b: (b, 0, 0, 0)),
            scratch_shapes=[
                pltpu.VMEM((B * Ho * Wo, K9), jnp.bfloat16),       # im2col LHS
                pltpu.VMEM((B, 2 * Hp, 2 * Wp, C2p), jnp.float32),  # padded conv output
                pltpu.VMEM((B, Hp, 2 * Wp + 1, C2p), jnp.float32),  # H-pooled rows + left pad
            ]),
        compiler_params=pltpu.CompilerParams(
            dimension_semantics=("parallel",),
            vmem_limit_bytes=64 * 1024 * 1024),
    )(quads, w_eff, b_eff)

    if Npad > N:
        out = out[:N]
    return jnp.transpose(out, (0, 3, 1, 2))                              # NHWC -> NCHW


def _reference(x_nchw, w_oihw, gamma, beta, run_mean, run_var, eps=1e-5,
               match_kernel_dtypes=False):
    x = jnp.transpose(x_nchw, (0, 2, 3, 1)).astype(jnp.float32)
    scale = gamma / jnp.sqrt(run_var + eps)
    w_hwio = jnp.transpose(w_oihw, (2, 3, 1, 0)) * scale[None, None, None, :]
    bias = beta - run_mean * scale
    if match_kernel_dtypes:
        # Round operands the same way the kernel does (bf16 on the MXU, f32 accumulate).
        x = x.astype(jnp.bfloat16).astype(jnp.float32)
        w_hwio = w_hwio.astype(jnp.bfloat16).astype(jnp.float32)
    conv = lax.conv_general_dilated(
        x, w_hwio, window_strides=(2, 2), padding=((1, 1), (1, 1)),
        dimension_numbers=("NHWC", "HWIO", "NHWC"),
        precision=lax.Precision.HIGHEST)
    y = jnp.maximum(conv + bias, 0.0)
    pooled = lax.reduce_window(
        y, -jnp.inf, lax.max,
        window_dimensions=(1, 3, 3, 1), window_strides=(1, 2, 2, 1),
        padding=((0, 0), (1, 1), (1, 1), (0, 0)))
    return jnp.transpose(pooled, (0, 3, 1, 2))


if __name__ == "__main__":
    N, C1, C2, Hi, Wi = 2, 4, 8, 16, 16

    key = jax.random.PRNGKey(0)
    kx, kw, kg, kb, km, kv = jax.random.split(key, 6)
    x = jax.random.normal(kx, (N, C1, Hi, Wi), dtype=jnp.float32)       # NCHW input
    w = jax.random.normal(kw, (C2, C1, 3, 3), dtype=jnp.float32) * 0.1  # Conv2d weight (no bias)
    gamma = 1.0 + 0.1 * jax.random.normal(kg, (C2,), dtype=jnp.float32)
    beta = 0.1 * jax.random.normal(kb, (C2,), dtype=jnp.float32)
    run_mean = 0.1 * jax.random.normal(km, (C2,), dtype=jnp.float32)
    run_var = 0.5 + jnp.abs(jax.random.normal(kv, (C2,), dtype=jnp.float32))

    out = jax.jit(bmconv_forward)(x, w, gamma, beta, run_mean, run_var)
    out = jax.block_until_ready(out)
    assert out.shape == (N, C2, 4, 4), out.shape

    # Tight check vs. a reference using the same bf16-rounded operands (validates the
    # kernel math itself: fused im2col dot, BN folding, ReLU, pooling, layout).
    ref_m = _reference(x, w, gamma, beta, run_mean, run_var, match_kernel_dtypes=True)
    assert jnp.allclose(out, ref_m, rtol=1e-3, atol=1e-3), \
        float(jnp.max(jnp.abs(out - ref_m)))

    # Sanity check vs. the full-f32 module semantics (difference = bf16 operand rounding).
    ref_f = _reference(x, w, gamma, beta, run_mean, run_var)
    assert jnp.allclose(out, ref_f, rtol=3e-2, atol=3e-2), \
        float(jnp.max(jnp.abs(out - ref_f)))

    print("KERNEL_OK")
</pallas_src>

<mosaic_0001>
module attributes {stable_mosaic.version = 11 : i64} {
  func.func @kernel(%arg0: i32, %arg1: memref<2x4x9x9x4xbf16, #tpu.memory_space<vmem>>, %arg2: memref<36x128xbf16, #tpu.memory_space<vmem>>, %arg3: memref<1x128xf32, #tpu.memory_space<vmem>>, %arg4: memref<2x4x4x8xf32, #tpu.memory_space<vmem>>, %arg5: memref<128x36xbf16, #tpu.memory_space<vmem>>, %arg6: memref<2x8x8x128xf32, #tpu.memory_space<vmem>>, %arg7: memref<2x4x9x128xf32, #tpu.memory_space<vmem>>) attributes {dimension_semantics = [#tpu.dimension_semantics<parallel>], iteration_bounds = array<i64: 1>, scalar_prefetch = 0 : i64, scratch_operands = 3 : i64, tpu.core_type = #tpu.core_type<tc>, window_params = [{transform_indices = @transform_0, window_bounds = array<i64: 2, 4, 9, 9, 4>}, {pipeline_mode = #tpu.pipeline_mode<synchronous>, transform_indices = @transform_1, window_bounds = array<i64: 36, 128>}, {pipeline_mode = #tpu.pipeline_mode<synchronous>, transform_indices = @transform_2, window_bounds = array<i64: 1, 128>}, {transform_indices = @transform_3, window_bounds = array<i64: 2, 4, 4, 8>}]} {
    %c0 = arith.constant 0 : index
    %c0_0 = arith.constant 0 : index
    %c0_1 = arith.constant 0 : index
    %c0_2 = arith.constant 0 : index
    %c0_3 = arith.constant 0 : index
    %0 = vector.load %arg1[%c0, %c0_0, %c0_1, %c0_2, %c0_3] : memref<2x4x9x9x4xbf16, #tpu.memory_space<vmem>>, vector<2x1x8x8x4xbf16>
    %1 = vector.shape_cast %0 : vector<2x1x8x8x4xbf16> to vector<2x8x8x4xbf16>
    %2 = vector.shape_cast %1 : vector<2x8x8x4xbf16> to vector<128x4xbf16>
    %c0_4 = arith.constant 0 : index
    %c0_5 = arith.constant 0 : index
    %3 = vector.load %arg5[%c0_4, %c0_5] : memref<128x36xbf16, #tpu.memory_space<vmem>>, vector<128x4xbf16>
    tpu.vector_store %arg5[%c0_4, %c0_5], %2 {strides = array<i32>} : memref<128x36xbf16, #tpu.memory_space<vmem>>, vector<128x4xbf16>,
    %c0_6 = arith.constant 0 : index
    %c1 = arith.constant 1 : index
    %c0_7 = arith.constant 0 : index
    %c0_8 = arith.constant 0 : index
    %c0_9 = arith.constant 0 : index
    %4 = vector.load %arg1[%c0_6, %c1, %c0_7, %c0_8, %c0_9] : memref<2x4x9x9x4xbf16, #tpu.memory_space<vmem>>, vector<2x1x8x8x4xbf16>
    %5 = vector.shape_cast %4 : vector<2x1x8x8x4xbf16> to vector<2x8x8x4xbf16>
    %6 = vector.shape_cast %5 : vector<2x8x8x4xbf16> to vector<128x4xbf16>
    %c0_10 = arith.constant 0 : index
    %c4 = arith.constant 4 : index
    %7 = vector.load %arg5[%c0_10, %c4] : memref<128x36xbf16, #tpu.memory_space<vmem>>, vector<128x4xbf16>
    tpu.vector_store %arg5[%c0_10, %c4], %6 {strides = array<i32>} : memref<128x36xbf16, #tpu.memory_space<vmem>>, vector<128x4xbf16>,
    %c0_11 = arith.constant 0 : index
    %c0_12 = arith.constant 0 : index
    %c0_13 = arith.constant 0 : index
    %c1_14 = arith.constant 1 : index
    %c0_15 = arith.constant 0 : index
    %8 = vector.load %arg1[%c0_11, %c0_12, %c0_13, %c1_14, %c0_15] : memref<2x4x9x9x4xbf16, #tpu.memory_space<vmem>>, vector<2x1x8x8x4xbf16>
    %9 = vector.shape_cast %8 : vector<2x1x8x8x4xbf16> to vector<2x8x8x4xbf16>
    %10 = vector.shape_cast %9 : vector<2x8x8x4xbf16> to vector<128x4xbf16>
    %c0_16 = arith.constant 0 : index
    %c8 = arith.constant 8 : index
    %11 = vector.load %arg5[%c0_16, %c8] : memref<128x36xbf16, #tpu.memory_space<vmem>>, vector<128x4xbf16>
    tpu.vector_store %arg5[%c0_16, %c8], %10 {strides = array<i32>} : memref<128x36xbf16, #tpu.memory_space<vmem>>, vector<128x4xbf16>,
    %c0_17 = arith.constant 0 : index
    %c2 = arith.constant 2 : index
    %c0_18 = arith.constant 0 : index
    %c0_19 = arith.constant 0 : index
    %c0_20 = arith.constant 0 : index
    %12 = vector.load %arg1[%c0_17, %c2, %c0_18, %c0_19, %c0_20] : memref<2x4x9x9x4xbf16, #tpu.memory_space<vmem>>, vector<2x1x8x8x4xbf16>
    %13 = vector.shape_cast %12 : vector<2x1x8x8x4xbf16> to vector<2x8x8x4xbf16>
    %14 = vector.shape_cast %13 : vector<2x8x8x4xbf16> to vector<128x4xbf16>
    %c0_21 = arith.constant 0 : index
    %c12 = arith.constant 12 : index
    %15 = vector.load %arg5[%c0_21, %c12] : memref<128x36xbf16, #tpu.memory_space<vmem>>, vector<128x4xbf16>
    tpu.vector_store %arg5[%c0_21, %c12], %14 {strides = array<i32>} : memref<128x36xbf16, #tpu.memory_space<vmem>>, vector<128x4xbf16>,
    %c0_22 = arith.constant 0 : index
    %c3 = arith.constant 3 : index
    %c0_23 = arith.constant 0 : index
    %c0_24 = arith.constant 0 : index
    %c0_25 = arith.constant 0 : index
    %16 = vector.load %arg1[%c0_22, %c3, %c0_23, %c0_24, %c0_25] : memref<2x4x9x9x4xbf16, #tpu.memory_space<vmem>>, vector<2x1x8x8x4xbf16>
    %17 = vector.shape_cast %16 : vector<2x1x8x8x4xbf16> to vector<2x8x8x4xbf16>
    %18 = vector.shape_cast %17 : vector<2x8x8x4xbf16> to vector<128x4xbf16>
    %c0_26 = arith.constant 0 : index
    %c16 = arith.constant 16 : index
    %19 = vector.load %arg5[%c0_26, %c16] : memref<128x36xbf16, #tpu.memory_space<vmem>>, vector<128x4xbf16>
    tpu.vector_store %arg5[%c0_26, %c16], %18 {strides = array<i32>} : memref<128x36xbf16, #tpu.memory_space<vmem>>, vector<128x4xbf16>,
    %c0_27 = arith.constant 0 : index
    %c2_28 = arith.constant 2 : index
    %c0_29 = arith.constant 0 : index
    %c1_30 = arith.constant 1 : index
    %c0_31 = arith.constant 0 : index
    %20 = vector.load %arg1[%c0_27, %c2_28, %c0_29, %c1_30, %c0_31] : memref<2x4x9x9x4xbf16, #tpu.memory_space<vmem>>, vector<2x1x8x8x4xbf16>
    %21 = vector.shape_cast %20 : vector<2x1x8x8x4xbf16> to vector<2x8x8x4xbf16>
    %22 = vector.shape_cast %21 : vector<2x8x8x4xbf16> to vector<128x4xbf16>
    %c0_32 = arith.constant 0 : index
    %c20 = arith.constant 20 : index
    %23 = vector.load %arg5[%c0_32, %c20] : memref<128x36xbf16, #tpu.memory_space<vmem>>, vector<128x4xbf16>
    tpu.vector_store %arg5[%c0_32, %c20], %22 {strides = array<i32>} : memref<128x36xbf16, #tpu.memory_space<vmem>>, vector<128x4xbf16>,
    %c0_33 = arith.constant 0 : index
    %c0_34 = arith.constant 0 : index
    %c1_35 = arith.constant 1 : index
    %c0_36 = arith.constant 0 : index
    %c0_37 = arith.constant 0 : index
    %24 = vector.load %arg1[%c0_33, %c0_34, %c1_35, %c0_36, %c0_37] : memref<2x4x9x9x4xbf16, #tpu.memory_space<vmem>>, vector<2x1x8x8x4xbf16>
    %25 = vector.shape_cast %24 : vector<2x1x8x8x4xbf16> to vector<2x8x8x4xbf16>
    %26 = vector.shape_cast %25 : vector<2x8x8x4xbf16> to vector<128x4xbf16>
    %c0_38 = arith.constant 0 : index
    %c24 = arith.constant 24 : index
    %27 = vector.load %arg5[%c0_38, %c24] : memref<128x36xbf16, #tpu.memory_space<vmem>>, vector<128x4xbf16>
    tpu.vector_store %arg5[%c0_38, %c24], %26 {strides = array<i32>} : memref<128x36xbf16, #tpu.memory_space<vmem>>, vector<128x4xbf16>,
    %c0_39 = arith.constant 0 : index
    %c1_40 = arith.constant 1 : index
    %c1_41 = arith.constant 1 : index
    %c0_42 = arith.constant 0 : index
    %c0_43 = arith.constant 0 : index
    %28 = vector.load %arg1[%c0_39, %c1_40, %c1_41, %c0_42, %c0_43] : memref<2x4x9x9x4xbf16, #tpu.memory_space<vmem>>, vector<2x1x8x8x4xbf16>
    %29 = vector.shape_cast %28 : vector<2x1x8x8x4xbf16> to vector<2x8x8x4xbf16>
    %30 = vector.shape_cast %29 : vector<2x8x8x4xbf16> to vector<128x4xbf16>
    %c0_44 = arith.constant 0 : index
    %c28 = arith.constant 28 : index
    %31 = vector.load %arg5[%c0_44, %c28] : memref<128x36xbf16, #tpu.memory_space<vmem>>, vector<128x4xbf16>
    tpu.vector_store %arg5[%c0_44, %c28], %30 {strides = array<i32>} : memref<128x36xbf16, #tpu.memory_space<vmem>>, vector<128x4xbf16>,
    %c0_45 = arith.constant 0 : index
    %c0_46 = arith.constant 0 : index
    %c1_47 = arith.constant 1 : index
    %c1_48 = arith.constant 1 : index
    %c0_49 = arith.constant 0 : index
    %32 = vector.load %arg1[%c0_45, %c0_46, %c1_47, %c1_48, %c0_49] : memref<2x4x9x9x4xbf16, #tpu.memory_space<vmem>>, vector<2x1x8x8x4xbf16>
    %33 = vector.shape_cast %32 : vector<2x1x8x8x4xbf16> to vector<2x8x8x4xbf16>
    %34 = vector.shape_cast %33 : vector<2x8x8x4xbf16> to vector<128x4xbf16>
    %c0_50 = arith.constant 0 : index
    %c32 = arith.constant 32 : index
    %35 = vector.load %arg5[%c0_50, %c32] : memref<128x36xbf16, #tpu.memory_space<vmem>>, vector<128x4xbf16>
    tpu.vector_store %arg5[%c0_50, %c32], %34 {strides = array<i32>} : memref<128x36xbf16, #tpu.memory_space<vmem>>, vector<128x4xbf16>,
    %c0_51 = arith.constant 0 : index
    %c0_52 = arith.constant 0 : index
    %36 = vector.load %arg5[%c0_51, %c0_52] : memref<128x36xbf16, #tpu.memory_space<vmem>>, vector<128x36xbf16>
    %c0_53 = arith.constant 0 : index
    %c0_54 = arith.constant 0 : index
    %37 = vector.load %arg2[%c0_53, %c0_54] : memref<36x128xbf16, #tpu.memory_space<vmem>>, vector<36x128xbf16>
    %cst = arith.constant dense<0.000000e+00> : vector<128x128xf32>
    %38 = tpu.matmul %36, %37, %cst {dimension_numbers = #tpu.dot_dimension_numbers<[1], [0], [0], [1], [0, 0, 1, 1], [], []>} : vector<128x36xbf16>, vector<36x128xbf16>, vector<128x128xf32> -> vector<128x128xf32>
    %c0_55 = arith.constant 0 : index
    %c0_56 = arith.constant 0 : index
    %39 = vector.load %arg3[%c0_55, %c0_56] : memref<1x128xf32, #tpu.memory_space<vmem>>, vector<1x128xf32>
    %40 = vector.broadcast %39 : vector<1x128xf32> to vector<128x128xf32>
    %41 = arith.addf %38, %40 : vector<128x128xf32>
    %cst_57 = arith.constant 0.000000e+00 : f32
    %42 = vector.broadcast %cst_57 : f32 to vector<128x128xf32>
    %43 = arith.maximumf %41, %42 : vector<128x128xf32>
    %44 = vector.shape_cast %43 : vector<128x128xf32> to vector<2x8x8x128xf32>
    %c0_58 = arith.constant 0 : index
    %c0_59 = arith.constant 0 : index
    %c0_60 = arith.constant 0 : index
    %c0_61 = arith.constant 0 : index
    %45 = vector.load %arg6[%c0_58, %c0_59, %c0_60, %c0_61] : memref<2x8x8x128xf32, #tpu.memory_space<vmem>>, vector<2x8x8x128xf32>
    tpu.vector_store %arg6[%c0_58, %c0_59, %c0_60, %c0_61], %44 {strides = array<i32>} : memref<2x8x8x128xf32, #tpu.memory_space<vmem>>, vector<2x8x8x128xf32>,
    %c0_62 = arith.constant 0 : index
    %c0_63 = arith.constant 0 : index
    %c0_64 = arith.constant 0 : index
    %c0_65 = arith.constant 0 : index
    %46 = vector.load %arg6[%c0_62, %c0_63, %c0_64, %c0_65] : memref<2x8x8x128xf32, #tpu.memory_space<vmem>>, vector<2x8x8x128xf32>
    %47 = vector.shape_cast %46 : vector<2x8x8x128xf32> to vector<2x4x2x8x128xf32>
    %48 = vector.extract_strided_slice %47 {offsets = [0, 0, 0, 0, 0], sizes = [2, 4, 1, 8, 128], strides = [1, 1, 1, 1, 1]} : vector<2x4x2x8x128xf32> to vector<2x4x1x8x128xf32>
    %49 = vector.shape_cast %48 : vector<2x4x1x8x128xf32> to vector<2x4x8x128xf32>
    %50 = vector.extract_strided_slice %47 {offsets = [0, 0, 1, 0, 0], sizes = [2, 4, 1, 8, 128], strides = [1, 1, 1, 1, 1]} : vector<2x4x2x8x128xf32> to vector<2x4x1x8x128xf32>
    %51 = vector.shape_cast %50 : vector<2x4x1x8x128xf32> to vector<2x4x8x128xf32>
    %cst_66 = arith.constant 0.000000e+00 : f32
    %52 = vector.broadcast %cst_66 : f32 to vector<2x1x8x128xf32>
    %53 = vector.extract_strided_slice %51 {offsets = [0, 0, 0, 0], sizes = [2, 3, 8, 128], strides = [1, 1, 1, 1]} : vector<2x4x8x128xf32> to vector<2x3x8x128xf32>
    %54 = tpu.concatenate %52, %53 in 1 : vector<2x1x8x128xf32>, vector<2x3x8x128xf32> -> vector<2x4x8x128xf32>
    %cst_67 = arith.constant 0.000000e+00 : f32
    %55 = vector.broadcast %cst_67 : f32 to vector<2x4x1x128xf32>
    %c0_68 = arith.constant 0 : index
    %c0_69 = arith.constant 0 : index
    %c0_70 = arith.constant 0 : index
    %c0_71 = arith.constant 0 : index
    %56 = vector.load %arg7[%c0_68, %c0_69, %c0_70, %c0_71] : memref<2x4x9x128xf32, #tpu.memory_space<vmem>>, vector<2x4x1x128xf32>
    tpu.vector_store %arg7[%c0_68, %c0_69, %c0_70, %c0_71], %55 {strides = array<i32>} : memref<2x4x9x128xf32, #tpu.memory_space<vmem>>, vector<2x4x1x128xf32>,
    %57 = arith.maximumf %49, %51 : vector<2x4x8x128xf32>
    %58 = arith.maximumf %57, %54 : vector<2x4x8x128xf32>
    %c0_72 = arith.constant 0 : index
    %c0_73 = arith.constant 0 : index
    %c1_74 = arith.constant 1 : index
    %c0_75 = arith.constant 0 : index
    %59 = vector.load %arg7[%c0_72, %c0_73, %c1_74, %c0_75] : memref<2x4x9x128xf32, #tpu.memory_space<vmem>>, vector<2x4x8x128xf32>
    tpu.vector_store %arg7[%c0_72, %c0_73, %c1_74, %c0_75], %58 {strides = array<i32>} : memref<2x4x9x128xf32, #tpu.memory_space<vmem>>, vector<2x4x8x128xf32>,
    %c0_76 = arith.constant 0 : index
    %c0_77 = arith.constant 0 : index
    %c0_78 = arith.constant 0 : index
    %c0_79 = arith.constant 0 : index
    %60 = tpu.strided_load %arg7[%c0_76, %c0_77, %c0_78, %c0_79] {strides = array<i32: 1, 1, 2, 1>} : memref<2x4x9x128xf32, #tpu.memory_space<vmem>>, vector<2x4x4x128xf32>
    %c0_80 = arith.constant 0 : index
    %c0_81 = arith.constant 0 : index
    %c1_82 = arith.constant 1 : index
    %c0_83 = arith.constant 0 : index
    %61 = tpu.strided_load %arg7[%c0_80, %c0_81, %c1_82, %c0_83] {strides = array<i32: 1, 1, 2, 1>} : memref<2x4x9x128xf32, #tpu.memory_space<vmem>>, vector<2x4x4x128xf32>
    %c0_84 = arith.constant 0 : index
    %c0_85 = arith.constant 0 : index
    %c2_86 = arith.constant 2 : index
    %c0_87 = arith.constant 0 : index
    %62 = tpu.strided_load %arg7[%c0_84, %c0_85, %c2_86, %c0_87] {strides = array<i32: 1, 1, 2, 1>} : memref<2x4x9x128xf32, #tpu.memory_space<vmem>>, vector<2x4x4x128xf32>
    %63 = arith.maximumf %61, %62 : vector<2x4x4x128xf32>
    %64 = arith.maximumf %63, %60 : vector<2x4x4x128xf32>
    %65 = vector.extract_strided_slice %64 {offsets = [0, 0, 0, 0], sizes = [2, 4, 4, 8], strides = [1, 1, 1, 1]} : vector<2x4x4x128xf32> to vector<2x4x4x8xf32>
    %c0_88 = arith.constant 0 : index
    %c0_89 = arith.constant 0 : index
    %c0_90 = arith.constant 0 : index
    %c0_91 = arith.constant 0 : index
    %66 = vector.load %arg4[%c0_88, %c0_89, %c0_90, %c0_91] : memref<2x4x4x8xf32, #tpu.memory_space<vmem>>, vector<2x4x4x8xf32>
    tpu.vector_store %arg4[%c0_88, %c0_89, %c0_90, %c0_91], %65 {strides = array<i32>} : memref<2x4x4x8xf32, #tpu.memory_space<vmem>>, vector<2x4x4x8xf32>,
    return
  }
  func.func @transform_0(%arg0: i32) -> (i32, i32, i32, i32, i32) {
    %c0_i32 = arith.constant 0 : i32
    %c0_i32_0 = arith.constant 0 : i32
    %c0_i32_1 = arith.constant 0 : i32
    %c0_i32_2 = arith.constant 0 : i32
    %c0_i32_3 = arith.constant 0 : i32
    return %arg0, %c0_i32, %c0_i32_0, %c0_i32_1, %c0_i32_2 : i32, i32, i32, i32, i32
  }
  func.func @transform_1(%arg0: i32) -> (i32, i32) {
    %c0_i32 = arith.constant 0 : i32
    %c0_i32_0 = arith.constant 0 : i32
    %c0_i32_1 = arith.constant 0 : i32
    return %c0_i32, %c0_i32_0 : i32, i32
  }
  func.func @transform_2(%arg0: i32) -> (i32, i32) {
    %c0_i32 = arith.constant 0 : i32
    %c0_i32_0 = arith.constant 0 : i32
    %c0_i32_1 = arith.constant 0 : i32
    return %c0_i32, %c0_i32_0 : i32, i32
  }
  func.func @transform_3(%arg0: i32) -> (i32, i32, i32, i32) {
    %c0_i32 = arith.constant 0 : i32
    %c0_i32_0 = arith.constant 0 : i32
    %c0_i32_1 = arith.constant 0 : i32
    %c0_i32_2 = arith.constant 0 : i32
    return %arg0, %c0_i32, %c0_i32_0, %c0_i32_1 : i32, i32, i32, i32
  }
}

</mosaic_0001>

<bundles_post_ra>
// kernel: bmconv_forward.1
= control target key start
LH: loop header
LB: loop body
LE: loop exit
PB: predicated region body
PF: predicated region fallthrough
CT: control target
= control target key end

     0   :  { %s2082_s16 = smov 4   ;;  %s3128_s0 = inlined_call_operand.vmem [shape: bf16[2,4,9,9,4], index: 0, kind: input, shape index: {}]   ;;  %s3129_s1 = inlined_call_operand.vmem [shape: bf16[36,128], index: 1, kind: input, shape index: {}]   ;;  %s3130_s2 = inlined_call_operand.vmem [shape: f32[1,128], index: 2, kind: input, shape index: {}]   ;;  %s3131_s3 = inlined_call_operand.hbm [shape: f32[2,4,4,8], index: 3, kind: output, shape index: {}]  }
   0x1   :  { %v1835_v0 = vld [vmem:[%s3128_s0 + $0x58] sm:$0xf]  ;;  %v1833_v1 = vld [vmem:[%s3128_s0 + $0x48] sm:$0xf]  ;;  %v1836_v3 = vld [vmem:[%s3128_s0 + $0x60] sm:$0xf] }
   0x2   :  { %86 = vrot.lane.b32.xlu1 %v1835_v0, %s2082_s16  ;;  %82 = vrot.lane.b32.xlu0 %v1833_v1, %s2082_s16  ;;  %v1837_v2 = vld [vmem:[%s3128_s0 + $0x68] sm:$0xf]  ;;  %v1834_v4 = vld [vmem:[%s3128_s0 + $0x50] sm:$0xf] }
   0x3   :  { %90 = vrot.lane.b32.xlu2 %v1837_v2, %s2082_s16  ;;  %v1838_v5 = vld [vmem:[%s3128_s0 + $0x70] sm:$0xf] }
   0xa   :  { %88 = vrot.lane.b32.xlu1 %v1836_v3, %s2082_s16  ;;  %84 = vrot.lane.b32.xlu0 %v1834_v4, %s2082_s16 }
   0xb   :  { %8 = vsyncpa [#allocation6], 0  ;;  %92 = vrot.lane.b32.xlu2 %v1838_v5, %s2082_s16  ;;  %v1840_v6 = vld [vmem:[%s3128_s0 + $0x80] sm:$0xf]  ;;  %v1839_v7 = vld [vmem:[%s3128_s0 + $0x78] sm:$0xf] }
   0xc   :  { %v1841_v8 = vld [vmem:[%s3128_s0 + $0x168] sm:$0xf]  ;;  %v147_v9 = vld [vmem:[%s3128_s0] sm:$0xf]  ;;  %v1843_v10 = vld [vmem:[%s3128_s0 + $0x178] sm:$0xf] }
   0xd   :  { %v1842_v11 = vld [vmem:[%s3128_s0 + $0x170] sm:$0xf]  ;;  %v183_v12 = vshrl.u32 %v147_v9, 16  ;;  %v186_v13 = vshll.u32 %v147_v9, 16  ;;  %v153_v14 = vld [vmem:[%s3128_s0 + $0x18] sm:$0xf] }
   0xe   :  { %v149_v15 = vld [vmem:[%s3128_s0 + $0x8] sm:$0xf]  ;;  %v1844_v16 = vld [vmem:[%s3128_s0 + $0x180] sm:$0xf]  ;;  %v151_v17 = vld [vmem:[%s3128_s0 + $0x10] sm:$0xf] }
   0xf   :  { %v197_v18 = vshrl.u32 %v149_v15, 16  ;;  %v200_v19 = vshll.u32 %v149_v15, 16  ;;  %v148_v20 = vld [vmem:[%s3128_s0 + $0x4] sm:$0x1]  ;;  %v185_v21 = vrot.slane %v183_v12, 4  ;;  %v188_v22 = vrot.slane %v186_v13, 5 }
  0x10   :  { %v225_v23 = vshrl.u32 %v153_v14, 16  ;;  %v228_v24 = vshll.u32 %v153_v14, 16  ;;  %v211_v25 = vshrl.u32 %v151_v17, 16  ;;  %v214_v26 = vshll.u32 %v151_v17, 16  ;;  %v150_v29 = vld [vmem:[%s3128_s0 + $0xc] sm:$0x1] }
  0x11   :  { %v199_v27 = vrot.slane %v197_v18, 4  ;;  %v202_v28 = vrot.slane %v200_v19, 5  ;;  %vm179_vm0 = vsmask.f32 3328  ;;  %v1846_v30 = vld [vmem:[%s3128_s0 + $0x190] sm:$0xf]  ;;  %v189_v33 = vor.u32 %v188_v22, %v185_v21 }
  0x12   :  { %96 = vrot.lane.b32.xlu1 %v1840_v6, %s2082_s16  ;;  %94 = vrot.lane.b32.xlu0 %v1839_v7, %s2082_s16  ;;  %v1845_v31 = vld [vmem:[%s3128_s0 + $0x188] sm:$0xf]  ;;  %v192_v32 = vshll.u32 %v148_v20, 16  ;;  %v154_v34 = vld [vmem:[%s3128_s0 + $0x1c] sm:$0x1]  ;;  %v227_v35 = vrot.slane %v225_v23, 4 }
  0x13   :  { %98 = vrot.lane.b32.xlu2 %v1841_v8, %s2082_s16  ;;  %v230_v36 = vrot.slane %v228_v24, 5  ;;  %v152_v37 = vld [vmem:[%s3128_s0 + $0x14] sm:$0x1]  ;;  %v213_v38 = vrot.slane %v211_v25, 4  ;;  %v216_v39 = vrot.slane %v214_v26, 5  ;;  %v203_v40 = vor.u32 %v202_v28, %v199_v27  ;;  %s2083_s23 = smov 8  }
  0x14   :  { %v206_v41 = vshll.u32 %v150_v29, 16  ;;  %v155_v42 = vld [vmem:[%s3128_s0 + $0x20] sm:$0xf]  ;;  %vm180_vm1 = vsmask.f32 7440  ;;  %v194_v46 = vrot.slane %v192_v32, 5 }
  0x15   :  { %v1847_v43 = vld [vmem:[%s3128_s0 + $0x198] sm:$0xf]  ;;  %v239_v44 = vshrl.u32 %v155_v42, 16  ;;  %v242_v45 = vshll.u32 %v155_v42, 16  ;;  %v234_v47 = vshll.u32 %v154_v34, 16  ;;  %v190_v48 = vrot.slane %v189_v33, 4  ;;  %vm2206_vm2 = vmor %vm179_vm0, %vm180_vm1 }
  0x16   :  { %v220_v49 = vshll.u32 %v152_v37, 16  ;;  %v159_v50 = vld [vmem:[%s3128_s0 + $0x30] sm:$0xf]  ;;  %v157_v51 = vld [vmem:[%s3128_s0 + $0x28] sm:$0xf]  ;;  %v231_v53 = vor.u32 %v230_v36, %v227_v35  ;;  %v217_v54 = vor.u32 %v216_v39, %v213_v38  ;;  %v204_v55 = vrot.slane %v203_v40, 4 }
  0x17   :  { %v208_v56 = vrot.slane %v206_v41, 5  ;;  %v241_v57 = vrot.slane %v239_v44, 4  ;;  %v244_v58 = vrot.slane %v242_v45, 5  ;;  %v267_v59 = vshrl.u32 %v159_v50, 16  ;;  %v156_v63 = vld [vmem:[%s3128_s0 + $0x24] sm:$0x1] }
  0x18   :  { %v270_v60 = vshll.u32 %v159_v50, 16  ;;  %v253_v61 = vshrl.u32 %v157_v51, 16  ;;  %v256_v62 = vshll.u32 %v157_v51, 16  ;;  %v195_v0 = vsel %vm2206_vm2, %v190_v48, %v194_v46  ;;  %v1848_v1 = vld [vmem:[%s3128_s0 + $0x1a0] sm:$0xf]  ;;  %s2084_s14 = smov 12  }
  0x19   :  { %v236_v2 = vrot.slane %v234_v47, 5  ;;  %v222_v3 = vrot.slane %v220_v49, 5  ;;  %v232_v4 = vrot.slane %v231_v53, 4  ;;  %v218_v5 = vrot.slane %v217_v54, 4  ;;  %v165_v7 = vld [vmem:[%s3128_s0 + $0x128] sm:$0xf] }
  0x1a   :  { %102 = vrot.lane.b32.xlu1 %v1843_v10, %s2082_s16  ;;  %100 = vrot.lane.b32.xlu0 %v1842_v11, %s2082_s16  ;;  %v209_v6 = vsel %vm2206_vm2, %v204_v55, %v208_v56  ;;  %v161_v8 = vld [vmem:[%s3128_s0 + $0x38] sm:$0xf]  ;;  %v163_v9 = vld [vmem:[%s3128_s0 + $0x120] sm:$0xf]  ;;  %v245_v10 = vor.u32 %v244_v58, %v241_v57  ;;  %v248_v11 = vshll.u32 %v156_v63, 16  ;;  %v269_v14 = vrot.slane %v267_v59, 4 }
  0x1b   :  { %104 = vrot.lane.b32.xlu2 %v1844_v16, %s2082_s16  ;;  %v281_v12 = vshrl.u32 %v161_v8, 16  ;;  %v284_v13 = vshll.u32 %v161_v8, 16  ;;  %v272_v15 = vrot.slane %v270_v60, 5  ;;  %v255_v16 = vrot.slane %v253_v61, 4  ;;  %v160_v18 = vld [vmem:[%s3128_s0 + $0x34] sm:$0x1] }
  0x1c   :  { %v258_v17 = vrot.slane %v256_v62, 5  ;;  %v158_v19 = vld [vmem:[%s3128_s0 + $0x2c] sm:$0x1]  ;;  %v309_v20 = vshrl.u32 %v165_v7, 16  ;;  %v312_v21 = vshll.u32 %v165_v7, 16  ;;  %v295_v22 = vshrl.u32 %v163_v9, 16 }
  0x1d   :  { %v298_v23 = vshll.u32 %v163_v9, 16  ;;  %v283_v24 = vrot.slane %v281_v12, 4  ;;  %v286_v25 = vrot.slane %v284_v13, 5  ;;  %v246_v26 = vrot.slane %v245_v10, 4  ;;  %v162_v28 = vld [vmem:[%s3128_s0 + $0x3c] sm:$0x1] }
  0x1e   :  { %v250_v27 = vrot.slane %v248_v11, 5  ;;  %v273_v29 = vor.u32 %v272_v15, %v269_v14  ;;  %v262_v32 = vshll.u32 %v158_v19, 16  ;;  %v237_v33 = vsel %vm2206_vm2, %v232_v4, %v236_v2  ;;  %v166_v35 = vld [vmem:[%s3128_s0 + $0x12c] sm:$0x1]  ;;  %v164_v38 = vld [vmem:[%s3128_s0 + $0x124] sm:$0x1] }
  0x1f   :  { %v223_v34 = vsel %vm2206_vm2, %v218_v5, %v222_v3  ;;  %v311_v36 = vrot.slane %v309_v20, 4  ;;  %v314_v37 = vrot.slane %v312_v21, 5  ;;  %v297_v39 = vrot.slane %v295_v22, 4  ;;  %v171_v54 = vld [vmem:[%s3128_s0 + $0x140] sm:$0xf]  ;;  %s2085_s29 = smov 16  }
  0x20   :  { %v300_v40 = vrot.slane %v298_v23, 5  ;;  %v287_v41 = vor.u32 %v286_v25, %v283_v24  ;;  %v290_v42 = vshll.u32 %v162_v28, 16  ;;  %v251_v44 = vsel %vm2206_vm2, %v246_v26, %v250_v27  ;;  %v169_v55 = vld [vmem:[%s3128_s0 + $0x138] sm:$0xf]  ;;  %v168_v2 = vld [vmem:[%s3128_s0 + $0x134] sm:$0x1] }
  0x21   :  { %v274_v47 = vrot.slane %v273_v29, 4  ;;  %v264_v50 = vrot.slane %v262_v32, 5  ;;  %v318_v51 = vshll.u32 %v166_v35, 16  ;;  %v304_v53 = vshll.u32 %v164_v38, 16  ;;  %v173_v10 = vld [vmem:[%s3128_s0 + $0x148] sm:$0xf] }
  0x22   :  { %108 = vrot.lane.b32.xlu1 %v1846_v30, %s2082_s16  ;;  %106 = vrot.lane.b32.xlu0 %v1845_v31, %s2082_s16  ;;  %v276_v30 = vshll.u32 %v160_v18, 16  ;;  %v259_v31 = vor.u32 %v258_v17, %v255_v16  ;;  %v315_v56 = vor.u32 %v314_v37, %v311_v36  ;;  %v301_v57 = vor.u32 %v300_v40, %v297_v39  ;;  %v172_v19 = vld [vmem:[%s3128_s0 + $0x144] sm:$0x1]  ;;  %v170_v20 = vld [vmem:[%s3128_s0 + $0x13c] sm:$0x1]  ;;  %s2086_s28 = smov 20  }
  0x23   :  { %110 = vrot.lane.b32.xlu2 %v1847_v43, %s2082_s16  ;;  %v167_v43 = vld [vmem:[%s3128_s0 + $0x130] sm:$0xf]  ;;  %v288_v58 = vrot.slane %v287_v41, 4  ;;  %v292_v59 = vrot.slane %v290_v42, 5  ;;  %v351_v62 = vshrl.u32 %v171_v54, 16  ;;  %v354_v63 = vshll.u32 %v171_v54, 16 }
  0x24   :  { %v323_v45 = vshrl.u32 %v167_v43, 16  ;;  %v326_v46 = vshll.u32 %v167_v43, 16  ;;  %v278_v48 = vrot.slane %v276_v30, 5  ;;  %v260_v49 = vrot.slane %v259_v31, 4  ;;  %v177_v23 = vld [vmem:[%s3128_s0 + $0x158] sm:$0xf] }
  0x25   :  { %v320_v5 = vrot.slane %v318_v51, 5  ;;  %v302_v7 = vrot.slane %v301_v57, 4  ;;  %v306_v8 = vrot.slane %v304_v53, 5  ;;  %v293_v9 = vsel %vm2206_vm2, %v288_v58, %v292_v59  ;;  %v175_v24 = vld [vmem:[%s3128_s0 + $0x150] sm:$0xf]  ;;  %s2087_s13 = smov 24  }
  0x26   :  { %v325_v60 = vrot.slane %v323_v45, 4  ;;  %v328_v61 = vrot.slane %v326_v46, 5  ;;  %v279_v3 = vsel %vm2206_vm2, %v274_v47, %v278_v48  ;;  %v265_v4 = vsel %vm2206_vm2, %v260_v49, %v264_v50  ;;  %v178_v45 = vld [vmem:[%s3128_s0 + $0x15c] sm:$0x1]  ;;  %v176_v50 = vld [vmem:[%s3128_s0 + $0x154] sm:$0x1] }
  0x27   :  { %v332_v12 = vshll.u32 %v168_v2, 16  ;;  %v365_v13 = vshrl.u32 %v173_v10, 16  ;;  %v368_v14 = vshll.u32 %v173_v10, 16  ;;  %v353_v15 = vrot.slane %v351_v62, 4  ;;  %v21_v10 = vld [vmem:[%s3128_s0 + $0x28] sm:$0xf] }
  0x28   :  { %v329_v11 = vor.u32 %v328_v61, %v325_v60  ;;  %v356_v16 = vrot.slane %v354_v63, 5  ;;  %v307_v22 = vsel %vm2206_vm2, %v302_v7, %v306_v8  ;;  %v360_v30 = vshll.u32 %v172_v19, 16  ;;  %v1851_v7 = vld [vmem:[%s3128_s0 + $0xa0] sm:$0xf]  ;;  %v1850_v8 = vld [vmem:[%s3128_s0 + $0x98] sm:$0xf] }
  0x29   :  { %v334_v26 = vrot.slane %v332_v12, 5  ;;  %v367_v27 = vrot.slane %v365_v13, 4  ;;  %v370_v28 = vrot.slane %v368_v14, 5  ;;  %v346_v32 = vshll.u32 %v170_v20, 16  ;;  %v17_v12 = vld [vmem:[%s3128_s0 + $0x8] sm:$0xf] }
  0x2a   :  { %406 = vrot.lane.b32.xlu1 %v195_v0, %s2083_s23  ;;  %112 = vrot.lane.b32.xlu0 %v1848_v1, %s2082_s16  ;;  %v337_v0 = vshrl.u32 %v169_v55, 16  ;;  %v340_v1 = vshll.u32 %v169_v55, 16  ;;  %v330_v25 = vrot.slane %v329_v11, 4  ;;  %v357_v29 = vor.u32 %v356_v16, %v353_v15  ;;  %v19_v11 = vld [vmem:[%s3128_s0 + $0x18] sm:$0xf]  ;;  %s2088_s4 = smov 28  }
  0x2b   :  { %408 = vrot.lane.b32.xlu2 %v209_v6, %s2083_s23  ;;  %v316_v6 = vrot.slane %v315_v56, 4  ;;  %v396_v35 = vshll.u32 %v177_v23, 16  ;;  %v379_v36 = vshrl.u32 %v175_v24, 16  ;;  %v382_v37 = vshll.u32 %v175_v24, 16  ;;  %v1854_v14 = vld [vmem:[%s3128_s0 + $0xb8] sm:$0xf] }
  0x2c   :  { %v339_v17 = vrot.slane %v337_v0, 4  ;;  %v342_v18 = vrot.slane %v340_v1, 5  ;;  %v335_v38 = vsel %vm2206_vm2, %v330_v25, %v334_v26  ;;  %v371_v39 = vor.u32 %v370_v28, %v367_v27  ;;  %v1853_v15 = vld [vmem:[%s3128_s0 + $0xb0] sm:$0xf]  ;;  %v1855_v16 = vld [vmem:[%s3128_s0 + $0xc0] sm:$0xf] }
  0x2d   :  { %v321_v21 = vsel %vm2206_vm2, %v316_v6, %v320_v5  ;;  %v358_v41 = vrot.slane %v357_v29, 4  ;;  %v362_v42 = vrot.slane %v360_v30, 5  ;;  %v398_v47 = vrot.slane %v396_v35, 5  ;;  %v18_v5 = vld [vmem:[%s3128_s0 + $0x10] sm:$0xf]  ;;  %s2089_s17 = smov 32  }
  0x2e   :  { %v343_v31 = vor.u32 %v342_v18, %v339_v17  ;;  %v381_v48 = vrot.slane %v379_v36, 4  ;;  %v384_v49 = vrot.slane %v382_v37, 5  ;;  %v372_v51 = vrot.slane %v371_v39, 4  ;;  %v16_v6 = vld [vmem:[%s3128_s0] sm:$0xf]  ;;  %s1821_s5 = sshll.u32 %s3131_s3, 4  ;;  %s1822_s5 = int_to_ptr.hbm [resolvable:$true] %s1821_s5 }
  0x2f   :  { %v363_v54 = vsel %vm2206_vm2, %v358_v41, %v362_v42  ;;  %v402_v55 = vshll.u32 %v178_v45, 16  ;;  %v388_v59 = vshll.u32 %v176_v50, 16  ;;  %vm32_vm3 = vcmask 27648   ;;  %v24_v17 = vld [vmem:[%s3128_s0 + $0x120] sm:$0xf]  ;;  %s2092_s6 = smov 64  }
  0x30   :  { %v344_v43 = vrot.slane %v343_v31, 4  ;;  %v385_v58 = vor.u32 %v384_v49, %v381_v48  ;;  %35 = vst.msk [vmem:[#allocation2 + $0x8] sm:$0xf] %vm32_vm3, %v18_v5  ;;  %vm130_vm4 = vcmask 60448   ;;  %v23_v18 = vld [vmem:[%s3128_s0 + $0x38] sm:$0xf] }
  0x31   :  { %v404_v62 = vrot.slane %v402_v55, 5  ;;  %v390_v0 = vrot.slane %v388_v59, 5  ;;  %33 = vst.msk [vmem:[#allocation2] sm:$0xf] %vm32_vm3, %v16_v6  ;;  %v22_v19 = vld [vmem:[%s3128_s0 + $0x30] sm:$0xf] }
  0x32   :  { %412 = vrot.lane.b32.xlu1 %v237_v33, %s2083_s23  ;;  %410 = vrot.lane.b32.xlu0 %v223_v34, %s2083_s23  ;;  %v174_v33 = vld [vmem:[%s3128_s0 + $0x14c] sm:$0x1]  ;;  %v393_v34 = vshrl.u32 %v177_v23, 16  ;;  %v386_v63 = vrot.slane %v385_v58, 4  ;;  %38 = vst.msk [vmem:[#allocation2 + $0x14] sm:$0xf] %vm32_vm3, %v21_v10 }
  0x33   :  { %414 = vrot.lane.b32.xlu2 %v251_v44, %s2083_s23  ;;  %v374_v40 = vshll.u32 %v174_v33, 16  ;;  %v348_v44 = vrot.slane %v346_v32, 5  ;;  %36 = vst.msk [vmem:[#allocation2 + $0xc] sm:$0xf] %vm32_vm3, %v19_v11  ;;  %v1858_v23 = vld [vmem:[%s3128_s0 + $0x1b8] sm:$0xf] }
  0x34   :  { %v395_v46 = vrot.slane %v393_v34, 4  ;;  %v391_v2 = vsel %vm2206_vm2, %v386_v63, %v390_v0  ;;  %34 = vst.msk [vmem:[#allocation2 + $0x4] sm:$0xf] %vm32_vm3, %v17_v12  ;;  %v27_v24 = vld [vmem:[%s3128_s0 + $0x138] sm:$0xf]  ;;  %vm454_vm5 = vcmask 93248  }
  0x35   :  { %v376_v53 = vrot.slane %v374_v40, 5  ;;  %v349_v56 = vsel %vm2206_vm2, %v344_v43, %v348_v44  ;;  %41 = vst.msk [vmem:[#allocation2 + $0x20] sm:$0xf] %vm32_vm3, %v24_v17  ;;  %v26_v25 = vld [vmem:[%s3128_s0 + $0x130] sm:$0xf]  ;;  %vm552_vm6 = vcmask 126048  }
  0x36   :  { %v399_v57 = vor.u32 %v398_v47, %v395_v46  ;;  %40 = vst.msk [vmem:[#allocation2 + $0x1c] sm:$0xf] %vm32_vm3, %v23_v18  ;;  %v25_v26 = vld [vmem:[%s3128_s0 + $0x128] sm:$0xf]  ;;  %v1859_v29 = vld [vmem:[%s3128_s0 + $0x1c0] sm:$0xf] }
  0x37   :  { %v377_v60 = vsel %vm2206_vm2, %v372_v51, %v376_v53  ;;  %39 = vst.msk [vmem:[#allocation2 + $0x18] sm:$0xf] %vm32_vm3, %v22_v19  ;;  %v1860_v28 = vld [vmem:[%s3128_s0 + $0x1c8] sm:$0xf]  ;;  %v1861_v30 = vld [vmem:[%s3128_s0 + $0x1d0] sm:$0xf] }
  0x38   :  { %v400_v61 = vrot.slane %v399_v57, 4  ;;  %44 = vst.msk [vmem:[#allocation2 + $0x2c] sm:$0xf] %vm32_vm3, %v27_v24  ;;  %v30_v31 = vld [vmem:[%s3128_s0 + $0x150] sm:$0xf]  ;;  %vm650_vm7 = vcmask 158848  }
  0x39   :  { %43 = vst.msk [vmem:[#allocation2 + $0x28] sm:$0xf] %vm32_vm3, %v26_v25  ;;  %v29_v34 = vld [vmem:[%s3128_s0 + $0x148] sm:$0xf]  ;;  %v28_v36 = vld [vmem:[%s3128_s0 + $0x140] sm:$0xf] }
  0x3a   :  { %418 = vrot.lane.b32.xlu1 %v279_v3, %s2083_s23  ;;  %416 = vrot.lane.b32.xlu0 %v265_v4, %s2083_s23  ;;  %v405_v1 = vsel %vm2206_vm2, %v400_v61, %v404_v62  ;;  %v1849_v3 = vld [vmem:[%s3128_s0 + $0x90] sm:$0xf]  ;;  %v20_v4 = vld [vmem:[%s3128_s0 + $0x20] sm:$0xf]  ;;  %42 = vst.msk [vmem:[#allocation2 + $0x24] sm:$0xf] %vm32_vm3, %v25_v26 }
  0x3b   :  { %420 = vrot.lane.b32.xlu2 %v293_v9, %s2083_s23  ;;  %37 = vst.msk [vmem:[#allocation2 + $0x10] sm:$0xf] %vm32_vm3, %v20_v4  ;;  %v1852_v9 = vld [vmem:[%s3128_s0 + $0xa8] sm:$0xf]  ;;  %v1863_v37 = vld [vmem:[%s3128_s0 + $0x1e0] sm:$0xf] }
  0x3c   :  { %47 = vst.msk [vmem:[#allocation2 + $0x38] sm:$0xf] %vm32_vm3, %v30_v31  ;;  %v1864_v39 = vld [vmem:[%s3128_s0 + $0x1e8] sm:$0xf]  ;;  %v31_v42 = vld [vmem:[%s3128_s0 + $0x158] sm:$0xf] }
  0x3d   :  { %46 = vst.msk [vmem:[#allocation2 + $0x34] sm:$0xf] %vm32_vm3, %v29_v34  ;;  %v1866_v44 = vld [vmem:[%s3128_s0 + $0xe0] sm:$0xf]  ;;  %v1865_v45 = vld [vmem:[%s3128_s0 + $0xd8] sm:$0xf] }
  0x3e   :  { %45 = vst.msk [vmem:[#allocation2 + $0x30] sm:$0xf] %vm32_vm3, %v28_v36  ;;  %v1867_v46 = vld [vmem:[%s3128_s0 + $0xe8] sm:$0xf]  ;;  %v1897_v47 = vld [vmem:[%s3128_s0 + $0x1b0] sm:$0xf] }
  0x3f   :  { %48 = vst.msk [vmem:[#allocation2 + $0x3c] sm:$0xf] %vm32_vm3, %v31_v42  ;;  %v812_v48 = vshrl.u32 %v1897_v47, 16  ;;  %v815_v49 = vshll.u32 %v1897_v47, 16  ;;  %v1905_v53 = vld [vmem:[%s3128_s0 + $0x1d0] sm:$0xf] }
  0x40   :  { %v1873_v55 = vld [vmem:[%s3128_s0 + $0x1f8] sm:$0xf]  ;;  %v868_v61 = vshrl.u32 %v1905_v53, 16  ;;  %v871_v62 = vshll.u32 %v1905_v53, 16  ;;  %v1878_v19 = vld [vmem:[%s3128_s0 + $0x220] sm:$0xf] }
  0x41   :  { %v814_v57 = vrot.slane %v812_v48, 4  ;;  %v817_v58 = vrot.slane %v815_v49, 5  ;;  %v1907_v4 = vld [vmem:[%s3128_s0 + $0x1d8] sm:$0xf]  ;;  %v1925_v47 = vld [vmem:[%s3128_s0 + $0x148] sm:$0xf] }
  0x42   :  { %424 = vrot.lane.b32.xlu1 %v321_v21, %s2083_s23  ;;  %422 = vrot.lane.b32.xlu0 %v307_v22, %s2083_s23  ;;  %v1857_v21 = vld [vmem:[%s3128_s0 + $0x1b0] sm:$0xf]  ;;  %v1856_v22 = vld [vmem:[%s3128_s0 + $0xc8] sm:$0xf]  ;;  %v882_v5 = vshrl.u32 %v1907_v4, 16  ;;  %v885_v6 = vshll.u32 %v1907_v4, 16 }
  0x43   :  { %426 = vrot.lane.b32.xlu2 %v335_v38, %s2083_s23  ;;  %v1862_v38 = vld [vmem:[%s3128_s0 + $0x1d8] sm:$0xf]  ;;  %v1969_v48 = vld [vmem:[%s3128_s0 + $0x148] sm:$0xf]  ;;  %v1963_v53 = vld [vmem:[%s3128_s0 + $0x130] sm:$0xf] }
  0x44   :  { %v884_v17 = vrot.slane %v882_v5, 4  ;;  %v887_v18 = vrot.slane %v885_v6, 5  ;;  %v1961_v49 = vld [vmem:[%s3128_s0 + $0x128] sm:$0xf]  ;;  %v1938_v5 = vld [vmem:[%s3128_s0 + $0x178] sm:$0xf] }
  0x45   :  { %vm971_vm8 = vcmask 191648   ;;  %vm1610_vm9 = vcmask 1041408   ;;  %vm1069_vm10 = vcmask 224448   ;;  %vm1167_vm11 = vcmask 257248  }
  0x46   :  { %vm1488_vm12 = vcmask 290048   ;;  %vm1585_vm13 = vcmask 293888   ;;  %vm1806_vm14 = vcmask 60416  }
  0x4a   :  { %430 = vrot.lane.b32.xlu1 %v363_v54, %s2083_s23  ;;  %428 = vrot.lane.b32.xlu0 %v349_v56, %s2083_s23  ;;  %v1899_v54 = vld [vmem:[%s3128_s0 + $0x1b8] sm:$0xf]  ;;  %v1868_v56 = vld [vmem:[%s3128_s0 + $0xf0] sm:$0xf] }
  0x4b   :  { %432 = vrot.lane.b32.xlu2 %v377_v60, %s2083_s23  ;;  %v1898_v60 = vld [vmem:[%s3128_s0 + $0x1b4] sm:$0x1]  ;;  %v826_v63 = vshrl.u32 %v1899_v54, 16  ;;  %v829_v0 = vshll.u32 %v1899_v54, 16 }
  0x4d   :  { %v831_v10 = vrot.slane %v829_v0, 5  ;;  %v1937_v0 = vld [vmem:[%s3128_s0 + $0x170] sm:$0xf] }
  0x52   :  { %436 = vrot.lane.b32.xlu1 %v405_v1, %s2083_s23  ;;  %434 = vrot.lane.b32.xlu0 %v391_v2, %s2083_s23  ;;  %v1874_v1 = vld [vmem:[%s3128_s0 + $0x200] sm:$0xf]  ;;  %v818_v2 = vor.u32 %v817_v58, %v814_v57  ;;  %v1388_v57 = vshll.u32 %v1969_v48, 16 }
  0x53   :  { %504 = vrot.lane.b32.xlu2 %v1849_v3, %s2084_s14  ;;  %v821_v3 = vshll.u32 %v1898_v60, 16  ;;  %v1343_v60 = vshrl.u32 %v1963_v53, 16 }
  0x54   :  { %v1390_v4 = vrot.slane %v1388_v57, 5 }
  0x5a   :  { %508 = vrot.lane.b32.xlu1 %v1851_v7, %s2084_s14  ;;  %506 = vrot.lane.b32.xlu0 %v1850_v8, %s2084_s14  ;;  %v870_v7 = vrot.slane %v868_v61, 4  ;;  %v873_v8 = vrot.slane %v871_v62, 5  ;;  %v1346_v61 = vshll.u32 %v1963_v53, 16 }
  0x5b   :  { %510 = vrot.lane.b32.xlu2 %v1852_v9, %s2084_s14  ;;  %v828_v9 = vrot.slane %v826_v63, 4  ;;  %v1962_v63 = vld [vmem:[%s3128_s0 + $0x12c] sm:$0x1] }
  0x5d   :  { %v91_v13 = vpop.permute.xlu2 %90  ;;  %v832_v25 = vor.u32 %v831_v10, %v828_v9  ;;  %v1345_v9 = vrot.slane %v1343_v60, 4  ;;  %v1348_v10 = vrot.slane %v1346_v61, 5 }
  0x5e   :  { %135 = vst.msk [vmem:[#allocation2 + $0x10] sm:$0xf] %vm130_vm4, %v91_v13  ;;  %v1906_v13 = vld [vmem:[%s3128_s0 + $0x1d4] sm:$0x1] }
  0x5f   :  { %v877_v24 = vshll.u32 %v1906_v13, 16  ;;  %v1964_v13 = vld [vmem:[%s3128_s0 + $0x134] sm:$0x1] }
  0x61   :  { %v879_v31 = vrot.slane %v877_v24, 5 }
  0x62   :  { %514 = vrot.lane.b32.xlu1 %v1854_v14, %s2084_s14  ;;  %512 = vrot.lane.b32.xlu0 %v1853_v15, %s2084_s14  ;;  %v1900_v14 = vld [vmem:[%s3128_s0 + $0x1bc] sm:$0x1]  ;;  %v819_v15 = vrot.slane %v818_v2, 4  ;;  %v1970_v2 = vld [vmem:[%s3128_s0 + $0x14c] sm:$0x1] }
  0x63   :  { %516 = vrot.lane.b32.xlu2 %v1855_v16, %s2084_s14  ;;  %v823_v16 = vrot.slane %v821_v3, 5  ;;  %v835_v26 = vshll.u32 %v1900_v14, 16 }
  0x65   :  { %v93_v20 = vpop.permute.xlu2 %92 }
  0x66   :  { %136 = vst.msk [vmem:[#allocation2 + $0x14] sm:$0xf] %vm130_vm4, %v93_v20 }
  0x6a   :  { %520 = vrot.lane.b32.xlu1 %v1857_v21, %s2084_s14  ;;  %518 = vrot.lane.b32.xlu0 %v1856_v22, %s2084_s14  ;;  %v1908_v21 = vld [vmem:[%s3128_s0 + $0x1dc] sm:$0x1]  ;;  %v1877_v22 = vld [vmem:[%s3128_s0 + $0x218] sm:$0xf] }
  0x6b   :  { %522 = vrot.lane.b32.xlu2 %v1858_v23, %s2084_s14  ;;  %v874_v23 = vor.u32 %v873_v8, %v870_v7  ;;  %v1338_v7 = vshll.u32 %v1962_v63, 16  ;;  %v1971_v8 = vld [vmem:[%s3128_s0 + $0x150] sm:$0xf] }
  0x6d   :  { %v99_v27 = vpop.permute.xlu2 %98 }
  0x6e   :  { %139 = vst.msk [vmem:[#allocation2 + $0x20] sm:$0xf] %vm130_vm4, %v99_v27  ;;  %v824_v27 = vsel %vm2206_vm2, %v819_v15, %v823_v16 }
  0x72   :  { %526 = vrot.lane.b32.xlu1 %v1860_v28, %s2084_s14  ;;  %524 = vrot.lane.b32.xlu0 %v1859_v29, %s2084_s14  ;;  %v888_v28 = vor.u32 %v887_v18, %v884_v17  ;;  %v891_v29 = vshll.u32 %v1908_v21, 16  ;;  %v1394_v17 = vshll.u32 %v1970_v2, 16 }
  0x73   :  { %528 = vrot.lane.b32.xlu2 %v1861_v30, %s2084_s14  ;;  %v875_v30 = vrot.slane %v874_v23, 4  ;;  %v1352_v23 = vshll.u32 %v1964_v13, 16 }
  0x74   :  { %v87_v32 = vpop.permute.xlu1 %86  ;;  %v83_v33 = vpop.permute.xlu0 %82  ;;  %v889_v36 = vrot.slane %v888_v28, 4 }
  0x75   :  { %133 = vst.msk [vmem:[#allocation2 + $0x8] sm:$0xf] %vm130_vm4, %v87_v32  ;;  %v105_v35 = vpop.permute.xlu2 %104  ;;  %v833_v32 = vrot.slane %v832_v25, 4  ;;  %v1972_v25 = vld [vmem:[%s3128_s0 + $0x154] sm:$0x1] }
  0x76   :  { %131 = vst.msk [vmem:[#allocation2] sm:$0xf] %vm130_vm4, %v83_v33  ;;  %v837_v33 = vrot.slane %v835_v26, 5  ;;  %v1942_v26 = vld [vmem:[%s3128_s0 + $0x198] sm:$0xf] }
  0x77   :  { %142 = vst.msk [vmem:[#allocation2 + $0x2c] sm:$0xf] %vm130_vm4, %v105_v35 }
  0x7a   :  { %532 = vrot.lane.b32.xlu1 %v1863_v37, %s2084_s14  ;;  %530 = vrot.lane.b32.xlu0 %v1862_v38, %s2084_s14  ;;  %v893_v37 = vrot.slane %v891_v29, 5  ;;  %v1396_v29 = vrot.slane %v1394_v17, 5 }
  0x7b   :  { %534 = vrot.lane.b32.xlu2 %v1864_v39, %s2084_s14  ;;  %v880_v39 = vsel %vm2206_vm2, %v875_v30, %v879_v31 }
  0x7c   :  { %v89_v40 = vpop.permute.xlu1 %88  ;;  %v85_v41 = vpop.permute.xlu0 %84 }
  0x7d   :  { %134 = vst.msk [vmem:[#allocation2 + $0xc] sm:$0xf] %vm130_vm4, %v89_v40  ;;  %v111_v43 = vpop.permute.xlu2 %110  ;;  %v838_v40 = vsel %vm2206_vm2, %v833_v32, %v837_v33  ;;  %v1408_v32 = vshll.u32 %v1972_v25, 16  ;;  %v1881_v33 = vld [vmem:[%s3128_s0 + $0x90] sm:$0xf] }
  0x7e   :  { %132 = vst.msk [vmem:[#allocation2 + $0x4] sm:$0xf] %vm130_vm4, %v85_v41  ;;  %v894_v41 = vsel %vm2206_vm2, %v889_v36, %v893_v37  ;;  %v700_v36 = vshrl.u32 %v1881_v33, 16  ;;  %v703_v37 = vshll.u32 %v1881_v33, 16 }
  0x7f   :  { %145 = vst.msk [vmem:[#allocation2 + $0x38] sm:$0xf] %vm130_vm4, %v111_v43 }
  0x82   :  { %604 = vrot.lane.b32.xlu1 %v1866_v44, %s2085_s29  ;;  %602 = vrot.lane.b32.xlu0 %v1865_v45, %s2085_s29  ;;  %v1922_v45 = vld [vmem:[%s3128_s0 + $0x130] sm:$0xf] }
  0x83   :  { %606 = vrot.lane.b32.xlu2 %v1867_v46, %s2085_s29  ;;  %v1921_v46 = vld [vmem:[%s3128_s0 + $0x128] sm:$0xf] }
  0x84   :  { %v97_v50 = vpop.permute.xlu1 %96  ;;  %v95_v51 = vpop.permute.xlu0 %94 }
  0x85   :  { %138 = vst.msk [vmem:[#allocation2 + $0x1c] sm:$0xf] %vm130_vm4, %v97_v50  ;;  %v409_v59 = vpop.permute.xlu2 %408  ;;  %v1329_v50 = vshrl.u32 %v1961_v49, 16 }
  0x86   :  { %137 = vst.msk [vmem:[#allocation2 + $0x18] sm:$0xf] %vm130_vm4, %v95_v51  ;;  %v1332_v51 = vshll.u32 %v1961_v49, 16  ;;  %v1882_v49 = vld [vmem:[%s3128_s0 + $0x94] sm:$0x1] }
  0x87   :  { %456 = vst.msk [vmem:[#allocation2 + $0x4] sm:$0xf] %vm454_vm5, %v409_v59  ;;  %v1331_v58 = vrot.slane %v1329_v50, 4  ;;  %v709_v57 = vshll.u32 %v1882_v49, 16 }
  0x88   :  { %v1334_v59 = vrot.slane %v1332_v51, 5 }
  0x8a   :  { %618 = vrot.lane.b32.xlu1 %v1873_v55, %s2085_s29  ;;  %608 = vrot.lane.b32.xlu0 %v1868_v56, %s2085_s29  ;;  %v1385_v56 = vshrl.u32 %v1969_v48, 16  ;;  %v1335_v6 = vor.u32 %v1334_v59, %v1331_v58  ;;  %v1891_v58 = vld [vmem:[%s3128_s0 + $0xb8] sm:$0xf] }
  0x8b   :  { %620 = vrot.lane.b32.xlu2 %v1874_v1, %s2085_s29  ;;  %v1926_v1 = vld [vmem:[%s3128_s0 + $0x150] sm:$0xf]  ;;  %v770_v59 = vshrl.u32 %v1891_v58, 16  ;;  %v773_v60 = vshll.u32 %v1891_v58, 16 }
  0x8c   :  { %v103_v11 = vpop.permute.xlu1 %102  ;;  %v101_v12 = vpop.permute.xlu0 %100  ;;  %v1387_v3 = vrot.slane %v1385_v56, 4  ;;  %v1336_v18 = vrot.slane %v1335_v6, 4  ;;  %v711_v6 = vrot.slane %v709_v57, 5 }
  0x8d   :  { %141 = vst.msk [vmem:[#allocation2 + $0x28] sm:$0xf] %vm130_vm4, %v103_v11  ;;  %v415_v20 = vpop.permute.xlu2 %414  ;;  %v1399_v11 = vshrl.u32 %v1971_v8, 16 }
  0x8e   :  { %140 = vst.msk [vmem:[#allocation2 + $0x24] sm:$0xf] %vm130_vm4, %v101_v12  ;;  %v1402_v12 = vshll.u32 %v1971_v8, 16  ;;  %v1391_v16 = vor.u32 %v1390_v4, %v1387_v3  ;;  %v1890_v3 = vld [vmem:[%s3128_s0 + $0xb4] sm:$0x1]  ;;  %v775_v8 = vrot.slane %v773_v60, 5 }
  0x8f   :  { %459 = vst.msk [vmem:[#allocation2 + $0x10] sm:$0xf] %vm454_vm5, %v415_v20  ;;  %v1401_v20 = vrot.slane %v1399_v11, 4  ;;  %v1884_v4 = vld [vmem:[%s3128_s0 + $0x9c] sm:$0x1] }
  0x90   :  { %v1404_v21 = vrot.slane %v1402_v12, 5  ;;  %v1392_v28 = vrot.slane %v1391_v16, 4  ;;  %v1892_v11 = vld [vmem:[%s3128_s0 + $0xbc] sm:$0x1]  ;;  %v1869_v12 = vld [vmem:[%s3128_s0 + $0xf8] sm:$0xf] }
  0x91   :  { %v723_v16 = vshll.u32 %v1884_v4, 16  ;;  %v1954_v4 = vld [vmem:[%s3128_s0 + $0x2c] sm:$0x1] }
  0x92   :  { %628 = vrot.lane.b32.xlu1 %v1878_v19, %s2085_s29  ;;  %626 = vrot.lane.b32.xlu0 %v1877_v22, %s2085_s29  ;;  %v1340_v19 = vrot.slane %v1338_v7, 5  ;;  %v1349_v22 = vor.u32 %v1348_v10, %v1345_v9  ;;  %v1405_v31 = vor.u32 %v1404_v21, %v1401_v20  ;;  %v772_v7 = vrot.slane %v770_v59, 4  ;;  %v1870_v9 = vld [vmem:[%s3128_s0 + $0x100] sm:$0xf]  ;;  %v1955_v59 = vld [vmem:[%s3128_s0 + $0x30] sm:$0xf] }
  0x93   :  { %939 = vrot.lane.b32.xlu2 %v824_v27, %s2086_s28  ;;  %v1941_v27 = vld [vmem:[%s3128_s0 + $0x190] sm:$0xf]  ;;  %v1287_v60 = vshrl.u32 %v1955_v59, 16 }
  0x94   :  { %v109_v34 = vpop.permute.xlu1 %108  ;;  %v107_v35 = vpop.permute.xlu0 %106  ;;  %v1341_v30 = vsel %vm2206_vm2, %v1336_v18, %v1340_v19  ;;  %v776_v18 = vor.u32 %v775_v8, %v772_v7  ;;  %v779_v19 = vshll.u32 %v1892_v11, 16 }
  0x95   :  { %144 = vst.msk [vmem:[#allocation2 + $0x34] sm:$0xf] %vm130_vm4, %v109_v34  ;;  %v421_v38 = vpop.permute.xlu2 %420  ;;  %v1350_v34 = vrot.slane %v1349_v22, 4 }
  0x96   :  { %143 = vst.msk [vmem:[#allocation2 + $0x30] sm:$0xf] %vm130_vm4, %v107_v35  ;;  %v1354_v35 = vrot.slane %v1352_v23, 5  ;;  %v725_v23 = vrot.slane %v723_v16, 5 }
  0x97   :  { %462 = vst.msk [vmem:[#allocation2 + $0x1c] sm:$0xf] %vm454_vm5, %v421_v38 }
  0x9a   :  { %947 = vrot.lane.b32.xlu1 %v880_v39, %s2086_s28  ;;  %941 = vrot.lane.b32.xlu0 %v838_v40, %s2086_s28  ;;  %v1889_v40 = vld [vmem:[%s3128_s0 + $0xb0] sm:$0xf] }
  0x9b   :  { %949 = vrot.lane.b32.xlu2 %v894_v41, %s2086_s28  ;;  %v1883_v41 = vld [vmem:[%s3128_s0 + $0x98] sm:$0xf]  ;;  %v756_v50 = vshrl.u32 %v1889_v40, 16  ;;  %v759_v51 = vshll.u32 %v1889_v40, 16 }
  0x9c   :  { %v407_v42 = vpop.permute.xlu1 %406  ;;  %v113_v43 = vpop.permute.xlu0 %112  ;;  %v714_v53 = vshrl.u32 %v1883_v41, 16 }
  0x9d   :  { %455 = vst.msk [vmem:[#allocation2] sm:$0xf] %vm454_vm5, %v407_v42  ;;  %v427_v44 = vpop.permute.xlu2 %426  ;;  %v1406_v42 = vrot.slane %v1405_v31, 4  ;;  %v758_v61 = vrot.slane %v756_v50, 4  ;;  %v1946_v50 = vld [vmem:[%s3128_s0 + $0xc] sm:$0x1] }
  0x9e   :  { %146 = vst.msk [vmem:[#allocation2 + $0x3c] sm:$0xf] %vm130_vm4, %v113_v43  ;;  %v1410_v43 = vrot.slane %v1408_v32, 5  ;;  %v716_v63 = vrot.slane %v714_v53, 4  ;;  %v1226_v58 = vshll.u32 %v1946_v50, 16 }
  0x9f   :  { %465 = vst.msk [vmem:[#allocation2 + $0x28] sm:$0xf] %vm454_vm5, %v427_v44  ;;  %v702_v44 = vrot.slane %v700_v36, 4  ;;  %v1913_v36 = vld [vmem:[%s3128_s0 + $0x8] sm:$0xf] }
  0xa0   :  { %v1228_v8 = vrot.slane %v1226_v58, 5 }
  0xa2   :  { %1039 = vrot.lane.b32.xlu1 %v1922_v45, %s2087_s13  ;;  %1037 = vrot.lane.b32.xlu0 %v1921_v46, %s2087_s13  ;;  %v705_v45 = vrot.slane %v703_v37, 5  ;;  %v1397_v46 = vsel %vm2206_vm2, %v1392_v28, %v1396_v29  ;;  %v1917_v37 = vld [vmem:[%s3128_s0 + $0x28] sm:$0xf] }
  0xa3   :  { %1045 = vrot.lane.b32.xlu2 %v1925_v47, %s2087_s13  ;;  %v1355_v47 = vsel %vm2206_vm2, %v1350_v34, %v1354_v35  ;;  %v1914_v35 = vld [vmem:[%s3128_s0 + $0x10] sm:$0xf] }
  0xa4   :  { %v413_v54 = vpop.permute.xlu1 %412  ;;  %v411_v55 = vpop.permute.xlu0 %410  ;;  %v706_v56 = vor.u32 %v705_v45, %v702_v44  ;;  %v1947_v44 = vld [vmem:[%s3128_s0 + $0x10] sm:$0xf] }
  0xa5   :  { %458 = vst.msk [vmem:[#allocation2 + $0xc] sm:$0xf] %vm454_vm5, %v413_v54  ;;  %v433_v62 = vpop.permute.xlu2 %432  ;;  %v717_v54 = vshll.u32 %v1883_v41, 16  ;;  %v1929_v45 = vld [vmem:[%s3128_s0 + $0x50] sm:$0xf] }
  0xa6   :  { %457 = vst.msk [vmem:[#allocation2 + $0x8] sm:$0xf] %vm454_vm5, %v411_v55  ;;  %v1411_v55 = vsel %vm2206_vm2, %v1406_v42, %v1410_v43  ;;  %v1953_v43 = vld [vmem:[%s3128_s0 + $0x28] sm:$0xf] }
  0xa7   :  { %468 = vst.msk [vmem:[#allocation2 + $0x34] sm:$0xf] %vm454_vm5, %v433_v62  ;;  %v761_v62 = vrot.slane %v759_v51, 5  ;;  %v1273_v51 = vshrl.u32 %v1953_v43, 16  ;;  %v1276_v53 = vshll.u32 %v1953_v43, 16 }
  0xa9   :  { %v762_v13 = vor.u32 %v761_v62, %v758_v61  ;;  %v1290_v61 = vshll.u32 %v1955_v59, 16  ;;  %v1275_v62 = vrot.slane %v1273_v51, 4  ;;  %v1879_v59 = vld [vmem:[%s3128_s0 + $0x228] sm:$0xf] }
  0xaa   :  { %1135 = vrot.lane.b32.xlu1 %v1937_v0, %s2088_s4  ;;  %1047 = vrot.lane.b32.xlu0 %v1926_v1, %s2087_s13  ;;  %v719_v0 = vrot.slane %v717_v54, 5  ;;  %v1231_v54 = vshrl.u32 %v1947_v44, 16 }
  0xab   :  { %1137 = vrot.lane.b32.xlu2 %v1938_v5, %s2088_s4  ;;  %v707_v5 = vrot.slane %v706_v56, 4  ;;  %v763_v20 = vrot.slane %v762_v13, 4  ;;  %v1930_v56 = vld [vmem:[%s3128_s0 + $0x58] sm:$0xf]  ;;  %v1933_v13 = vld [vmem:[%s3128_s0 + $0x70] sm:$0xf] }
  0xac   :  { %v419_v14 = vpop.permute.xlu1 %418  ;;  %v417_v15 = vpop.permute.xlu0 %416 }
  0xad   :  { %461 = vst.msk [vmem:[#allocation2 + $0x18] sm:$0xf] %vm454_vm5, %v419_v14  ;;  %v505_v24 = vpop.permute.xlu2 %504  ;;  %v765_v14 = vshll.u32 %v1890_v3, 16  ;;  %v712_v17 = vsel %vm2206_vm2, %v707_v5, %v711_v6  ;;  %v1948_v5 = vld [vmem:[%s3128_s0 + $0x14] sm:$0x1] }
  0xae   :  { %460 = vst.msk [vmem:[#allocation2 + $0x14] sm:$0xf] %vm454_vm5, %v417_v15  ;;  %v720_v15 = vor.u32 %v719_v0, %v716_v63  ;;  %v1278_v63 = vrot.slane %v1276_v53, 5  ;;  %v1233_v0 = vrot.slane %v1231_v54, 4  ;;  %v1934_v6 = vld [vmem:[%s3128_s0 + $0x78] sm:$0xf] }
  0xaf   :  { %553 = vst.msk [vmem:[#allocation2] sm:$0xf] %vm552_vm6, %v505_v24  ;;  %v767_v21 = vrot.slane %v765_v14, 5  ;;  %v1904_v53 = vld [vmem:[%s3128_s0 + $0x1cc] sm:$0x1] }
  0xb0   :  { %v721_v22 = vrot.slane %v720_v15, 4  ;;  %v1279_v14 = vor.u32 %v1278_v63, %v1275_v62  ;;  %v1282_v15 = vshll.u32 %v1954_v4, 16  ;;  %v1875_v54 = vld [vmem:[%s3128_s0 + $0x208] sm:$0xf] }
  0xb1   :  { %v768_v29 = vsel %vm2206_vm2, %v763_v20, %v767_v21 }
  0xb2   :  { %1145 = vrot.lane.b32.xlu1 %v1942_v26, %s2088_s4  ;;  %1143 = vrot.lane.b32.xlu0 %v1941_v27, %s2088_s4  ;;  %v777_v26 = vrot.slane %v776_v18, 4  ;;  %v781_v27 = vrot.slane %v779_v19, 5  ;;  %v1280_v21 = vrot.slane %v1279_v14, 4 }
  0xb3   :  { %1456 = vrot.lane.b32.xlu2 %v1341_v30, %s2089_s17  ;;  %v726_v30 = vsel %vm2206_vm2, %v721_v22, %v725_v23  ;;  %v1284_v22 = vrot.slane %v1282_v15, 5 }
  0xb4   :  { %v425_v38 = vpop.permute.xlu1 %424  ;;  %v423_v39 = vpop.permute.xlu0 %422  ;;  %v782_v31 = vsel %vm2206_vm2, %v777_v26, %v781_v27 }
  0xb5   :  { %464 = vst.msk [vmem:[#allocation2 + $0x24] sm:$0xf] %vm454_vm5, %v425_v38  ;;  %v511_v48 = vpop.permute.xlu2 %510  ;;  %v1945_v38 = vld [vmem:[%s3128_s0 + $0x8] sm:$0xf] }
  0xb6   :  { %463 = vst.msk [vmem:[#allocation2 + $0x20] sm:$0xf] %vm454_vm5, %v423_v39  ;;  %v1217_v39 = vshrl.u32 %v1945_v38, 16  ;;  %v1220_v40 = vshll.u32 %v1945_v38, 16 }
  0xb7   :  { %556 = vst.msk [vmem:[#allocation2 + $0xc] sm:$0xf] %vm552_vm6, %v511_v48  ;;  %v1918_v48 = vld [vmem:[%s3128_s0 + $0x30] sm:$0xf] }
  0xba   :  { %1464 = vrot.lane.b32.xlu1 %v1397_v46, %s2089_s17  ;;  %1458 = vrot.lane.b32.xlu0 %v1355_v47, %s2089_s17  ;;  %v1219_v46 = vrot.slane %v1217_v39, 4  ;;  %v1222_v47 = vrot.slane %v1220_v40, 5 }
  0xbb   :  { %1466 = vrot.lane.b32.xlu2 %v1411_v55, %s2089_s17  ;;  %v1234_v55 = vshll.u32 %v1947_v44, 16  ;;  %v1911_v44 = vld [vmem:[%s3128_s0 + $0x1e8] sm:$0xf] }
  0xbc   :  { %v431_v1 = vpop.permute.xlu1 %430  ;;  %v429_v2 = vpop.permute.xlu0 %428  ;;  %v1223_v57 = vor.u32 %v1222_v47, %v1219_v46  ;;  %v1876_v46 = vld [vmem:[%s3128_s0 + $0x210] sm:$0xf] }
  0xbd   :  { %467 = vst.msk [vmem:[#allocation2 + $0x30] sm:$0xf] %vm454_vm5, %v431_v1  ;;  %v517_v10 = vpop.permute.xlu2 %516  ;;  %v1236_v1 = vrot.slane %v1234_v55, 5  ;;  %v910_v55 = vshrl.u32 %v1911_v44, 16 }
  0xbe   :  { %466 = vst.msk [vmem:[#allocation2 + $0x2c] sm:$0xf] %vm454_vm5, %v429_v2  ;;  %v1224_v7 = vrot.slane %v1223_v57, 4 }
  0xbf   :  { %559 = vst.msk [vmem:[#allocation2 + $0x18] sm:$0xf] %vm552_vm6, %v517_v10  ;;  %v1292_v10 = vrot.slane %v1290_v61, 5  ;;  %v1237_v16 = vor.u32 %v1236_v1, %v1233_v0  ;;  %v863_v61 = vshll.u32 %v1904_v53, 16  ;;  %v912_v0 = vrot.slane %v910_v55, 4 }
  0xc0   :  { %v1229_v18 = vsel %vm2206_vm2, %v1224_v7, %v1228_v8  ;;  %v1910_v7 = vld [vmem:[%s3128_s0 + $0x1e4] sm:$0x1] }
  0xc1   :  { %v1238_v23 = vrot.slane %v1237_v16, 4  ;;  %v905_v16 = vshll.u32 %v1910_v7, 16 }
  0xc2   :  { %612 = vrot.lane.b32.xlu1 %v1870_v9, %s2085_s29  ;;  %610 = vrot.lane.b32.xlu0 %v1869_v12, %s2085_s29  ;;  %v1289_v9 = vrot.slane %v1287_v60, 4  ;;  %v1956_v12 = vld [vmem:[%s3128_s0 + $0x34] sm:$0x1] }
  0xc3   :  { %923 = vrot.lane.b32.xlu2 %v712_v17, %s2086_s28  ;;  %v1240_v17 = vshll.u32 %v1948_v5, 16  ;;  %v1296_v20 = vshll.u32 %v1956_v12, 16  ;;  %v1880_v12 = vld [vmem:[%s3128_s0 + $0x230] sm:$0xf] }
  0xc4   :  { %v437_v24 = vpop.permute.xlu1 %436  ;;  %v435_v25 = vpop.permute.xlu0 %434  ;;  %v1293_v19 = vor.u32 %v1292_v10, %v1289_v9  ;;  %v865_v9 = vrot.slane %v863_v61, 5  ;;  %v1968_v61 = vld [vmem:[%s3128_s0 + $0x144] sm:$0x1] }
  0xc5   :  { %470 = vst.msk [vmem:[#allocation2 + $0x3c] sm:$0xf] %vm454_vm5, %v437_v24  ;;  %v523_v28 = vpop.permute.xlu2 %522  ;;  %v1242_v24 = vrot.slane %v1240_v17, 5 }
  0xc6   :  { %469 = vst.msk [vmem:[#allocation2 + $0x38] sm:$0xf] %vm454_vm5, %v435_v25  ;;  %v1901_v25 = vld [vmem:[%s3128_s0 + $0x1c0] sm:$0xf] }
  0xc7   :  { %562 = vst.msk [vmem:[#allocation2 + $0x24] sm:$0xf] %vm552_vm6, %v523_v28  ;;  %v1294_v28 = vrot.slane %v1293_v19, 4 }
  0xca   :  { %931 = vrot.lane.b32.xlu1 %v768_v29, %s2086_s28  ;;  %925 = vrot.lane.b32.xlu0 %v726_v30, %s2086_s28  ;;  %v1298_v29 = vrot.slane %v1296_v20, 5  ;;  %v840_v30 = vshrl.u32 %v1901_v25, 16 }
  0xcb   :  { %933 = vrot.lane.b32.xlu2 %v782_v31, %s2086_s28  ;;  %v843_v31 = vshll.u32 %v1901_v25, 16 }
  0xcc   :  { %v509_v32 = vpop.permute.xlu1 %508  ;;  %v507_v33 = vpop.permute.xlu0 %506 }
  0xcd   :  { %555 = vst.msk [vmem:[#allocation2 + $0x8] sm:$0xf] %vm552_vm6, %v509_v32  ;;  %v529_v34 = vpop.permute.xlu2 %528  ;;  %v845_v38 = vrot.slane %v843_v31, 5  ;;  %v1927_v31 = vld [vmem:[%s3128_s0 + $0x158] sm:$0xf] }
  0xce   :  { %554 = vst.msk [vmem:[#allocation2 + $0x4] sm:$0xf] %vm552_vm6, %v507_v33  ;;  %v1285_v33 = vsel %vm2206_vm2, %v1280_v21, %v1284_v22  ;;  %v907_v21 = vrot.slane %v905_v16, 5 }
  0xcf   :  { %565 = vst.msk [vmem:[#allocation2 + $0x30] sm:$0xf] %vm552_vm6, %v529_v34  ;;  %v1243_v34 = vsel %vm2206_vm2, %v1238_v23, %v1242_v24 }
  0xd2   :  { %1023 = vrot.lane.b32.xlu1 %v1914_v35, %s2087_s13  ;;  %1021 = vrot.lane.b32.xlu0 %v1913_v36, %s2087_s13  ;;  %v1299_v35 = vsel %vm2206_vm2, %v1294_v28, %v1298_v29  ;;  %v1903_v36 = vld [vmem:[%s3128_s0 + $0x1c8] sm:$0xf] }
  0xd3   :  { %1029 = vrot.lane.b32.xlu2 %v1917_v37, %s2087_s13  ;;  %v842_v37 = vrot.slane %v840_v30, 4  ;;  %v854_v39 = vshrl.u32 %v1903_v36, 16  ;;  %v857_v40 = vshll.u32 %v1903_v36, 16  ;;  %v1965_v30 = vld [vmem:[%s3128_s0 + $0x138] sm:$0xf] }
  0xd4   :  { %v515_v41 = vpop.permute.xlu1 %514  ;;  %v513_v42 = vpop.permute.xlu0 %512  ;;  %v1525_v36 = vld [vmem:[%s3129_s1 + $0x10] sm:$0x3] }
  0xd5   :  { %558 = vst.msk [vmem:[#allocation2 + $0x14] sm:$0xf] %vm552_vm6, %v515_v41  ;;  %v535_v49 = vpop.permute.xlu2 %534  ;;  %v1902_v41 = vld [vmem:[%s3128_s0 + $0x1c4] sm:$0x1]  ;;  %v856_v47 = vrot.slane %v854_v39, 4 }
  0xd6   :  { %557 = vst.msk [vmem:[#allocation2 + $0x10] sm:$0xf] %vm552_vm6, %v513_v42  ;;  %v849_v50 = vshll.u32 %v1902_v41, 16  ;;  %v1975_v39 = vld [vmem:[%s3128_s0 + $0x160] sm:$0xf] }
  0xd7   :  { %568 = vst.msk [vmem:[#allocation2 + $0x3c] sm:$0xf] %vm552_vm6, %v535_v49  ;;  %v846_v49 = vor.u32 %v845_v38, %v842_v37  ;;  %v1579_v37 = vunpack.c.l.b16 %v1525_v36  ;;  %v1928_v38 = vld [vmem:[%s3128_s0 + $0x160] sm:$0xf]  ;;  %v1973_v41 = vld [vmem:[%s3128_s0 + $0x158] sm:$0xf] }
  0xd8   :  { %v851_v63 = vrot.slane %v849_v50, 5  ;;  %v1427_v50 = vshrl.u32 %v1975_v39, 16  ;;  %v1413_v55 = vshrl.u32 %v1973_v41, 16 }
  0xd9   :  { %v847_v62 = vrot.slane %v846_v49, 4  ;;  %v1966_v49 = vld [vmem:[%s3128_s0 + $0x13c] sm:$0x1] }
  0xda   :  { %1119 = vrot.lane.b32.xlu1 %v1929_v45, %s2088_s4  ;;  %1031 = vrot.lane.b32.xlu0 %v1918_v48, %s2087_s13  ;;  %v1909_v45 = vld [vmem:[%s3128_s0 + $0x1e0] sm:$0xf]  ;;  %v859_v48 = vrot.slane %v857_v40, 5 }
  0xdb   :  { %1121 = vrot.lane.b32.xlu2 %v1930_v56, %s2088_s4  ;;  %v913_v56 = vshll.u32 %v1911_v44, 16  ;;  %v896_v57 = vshrl.u32 %v1909_v45, 16  ;;  %v899_v58 = vshll.u32 %v1909_v45, 16  ;;  %v852_v10 = vsel %vm2206_vm2, %v847_v62, %v851_v63  ;;  %v1967_v40 = vld [vmem:[%s3128_s0 + $0x140] sm:$0xf] }
  0xdc   :  { %v521_v2 = vpop.permute.xlu1 %520  ;;  %v519_v3 = vpop.permute.xlu0 %518  ;;  %v860_v60 = vor.u32 %v859_v48, %v856_v47  ;;  %v1939_v62 = vld [vmem:[%s3128_s0 + $0x180] sm:$0xf] }
  0xdd   :  { %561 = vst.msk [vmem:[#allocation2 + $0x20] sm:$0xf] %vm552_vm6, %v521_v2  ;;  %v607_v11 = vpop.permute.xlu2 %606  ;;  %v915_v1 = vrot.slane %v913_v56, 5  ;;  %v898_v2 = vrot.slane %v896_v57, 4  ;;  %v1416_v56 = vshll.u32 %v1973_v41, 16 }
  0xde   :  { %560 = vst.msk [vmem:[#allocation2 + $0x1c] sm:$0xf] %vm552_vm6, %v519_v3  ;;  %v901_v3 = vrot.slane %v899_v58, 5  ;;  %v861_v8 = vrot.slane %v860_v60, 4  ;;  %v2034_v60 = vld [vmem:[%s3129_s1 + $0x8] sm:$0xff] }
  0xdf   :  { %653 = vst.msk [vmem:[#allocation2 + $0x8] sm:$0xf] %vm650_vm7, %v607_v11  ;;  %v1893_v41 = vld [vmem:[%s3128_s0 + $0xc0] sm:$0xf] }
  0xe0   :  { %v902_v15 = vor.u32 %v901_v3, %v898_v2  ;;  %v866_v17 = vsel %vm2206_vm2, %v861_v8, %v865_v9  ;;  %v1429_v2 = vrot.slane %v1427_v50, 4  ;;  %v1380_v8 = vshll.u32 %v1968_v61, 16  ;;  %v1974_v9 = vld [vmem:[%s3128_s0 + $0x15c] sm:$0x1] }
  0xe2   :  { %1129 = vrot.lane.b32.xlu1 %v1934_v6, %s2088_s4  ;;  %1127 = vrot.lane.b32.xlu0 %v1933_v13, %s2088_s4  ;;  %v1912_v6 = vld [vmem:[%s3128_s0 + $0x1ec] sm:$0x1]  ;;  %v916_v13 = vor.u32 %v915_v1, %v912_v0  ;;  %v903_v20 = vrot.slane %v902_v15, 4  ;;  %v1366_v0 = vshll.u32 %v1966_v49, 16  ;;  %v1976_v1 = vld [vmem:[%s3128_s0 + $0x164] sm:$0x1] }
  0xe3   :  { %1440 = vrot.lane.b32.xlu2 %v1229_v18, %s2089_s17  ;;  %v919_v14 = vshll.u32 %v1912_v6, 16  ;;  %v1943_v6 = vld [vmem:[%s3128_s0 + $0x1a0] sm:$0xf]  ;;  %v1888_v49 = vld [vmem:[%s3128_s0 + $0xac] sm:$0x1] }
  0xe4   :  { %v527_v26 = vpop.permute.xlu1 %526  ;;  %v525_v27 = vpop.permute.xlu0 %524  ;;  %v917_v18 = vrot.slane %v916_v13, 4  ;;  %v1885_v13 = vld [vmem:[%s3128_s0 + $0xa0] sm:$0xf] }
  0xe5   :  { %564 = vst.msk [vmem:[#allocation2 + $0x2c] sm:$0xf] %vm552_vm6, %v527_v26  ;;  %v621_v32 = vpop.permute.xlu2 %620  ;;  %v921_v19 = vrot.slane %v919_v14, 5  ;;  %v908_v26 = vsel %vm2206_vm2, %v903_v20, %v907_v21  ;;  %v1382_v21 = vrot.slane %v1380_v8, 5  ;;  %v1872_v8 = vld [vmem:[%s3128_s0 + $0x110] sm:$0xf] }
  0xe6   :  { %563 = vst.msk [vmem:[#allocation2 + $0x28] sm:$0xf] %vm552_vm6, %v525_v27  ;;  %v1923_v27 = vld [vmem:[%s3128_s0 + $0x138] sm:$0xf] }
  0xe7   :  { %660 = vst.msk [vmem:[#allocation2 + $0x24] sm:$0xf] %vm650_vm7, %v621_v32  ;;  %v922_v25 = vsel %vm2206_vm2, %v917_v18, %v921_v19  ;;  %v1924_v32 = vld [vmem:[%s3128_s0 + $0x140] sm:$0xf]  ;;  %v1422_v19 = vshll.u32 %v1974_v9, 16 }
  0xea   :  { %1448 = vrot.lane.b32.xlu1 %v1285_v33, %s2089_s17  ;;  %1442 = vrot.lane.b32.xlu0 %v1243_v34, %s2089_s17  ;;  %v1357_v34 = vshrl.u32 %v1965_v30, 16 }
  0xeb   :  { %1450 = vrot.lane.b32.xlu2 %v1299_v35, %s2089_s17  ;;  %v1360_v35 = vshll.u32 %v1965_v30, 16  ;;  %v1424_v30 = vrot.slane %v1422_v19, 5 }
  0xec   :  { %v533_v42 = vpop.permute.xlu1 %532  ;;  %v531_v43 = vpop.permute.xlu0 %530  ;;  %v1359_v44 = vrot.slane %v1357_v34, 4 }
  0xed   :  { %567 = vst.msk [vmem:[#allocation2 + $0x38] sm:$0xf] %vm552_vm6, %v533_v42  ;;  %v940_v51 = vpop.permute.xlu2 %939  ;;  %v1582_v42 = vpack.c.b16 %v1579_v37, %v1579_v37  ;;  %v1362_v45 = vrot.slane %v1360_v35, 5  ;;  %v1886_v37 = vld [vmem:[%s3128_s0 + $0xa4] sm:$0x1] }
  0xee   :  { %566 = vst.msk [vmem:[#allocation2 + $0x34] sm:$0xf] %vm552_vm6, %v531_v43  ;;  %v1371_v43 = vshrl.u32 %v1967_v40, 16 }
  0xef   :  { %v1612_v53 = vsel %vm1610_vm9, %v1582_v42, 0  ;;  %v1363_v63 = vor.u32 %v1362_v45, %v1359_v44 }
  0xf0   :  { %2036 = vmatpush.bf16.msra.mxu2 %v1612_v53  ;;  %2037 = vmatpush.bf16.msra.mxu3 %v1612_v53  ;;  %v1373_v57 = vrot.slane %v1371_v43, 4 }
  0xf1   :  { %1619 = vmatpush.bf16.msra.mxu0 %v1612_v53  ;;  %2035 = vmatpush.bf16.msra.mxu1 %v1612_v53  ;;  %v784_v53 = vshrl.u32 %v1893_v41, 16 }
  0xf2   :  { %624 = vrot.lane.b32.xlu1 %v1876_v46, %s2085_s29  ;;  %622 = vrot.lane.b32.xlu0 %v1875_v54, %s2085_s29  ;;  %v1374_v46 = vshll.u32 %v1967_v40, 16  ;;  %v1940_v54 = vld [vmem:[%s3128_s0 + $0x188] sm:$0xf] }
  0xf3   :  { %630 = vrot.lane.b32.xlu2 %v1879_v59, %s2085_s29  ;;  %v1895_v40 = vld [vmem:[%s3128_s0 + $0xc8] sm:$0xf] }
  0xf4   :  { %v605_v4 = vpop.permute.xlu1 %604  ;;  %v603_v5 = vpop.permute.xlu0 %602  ;;  %v1376_v58 = vrot.slane %v1374_v46, 5  ;;  %2039 = vmatpush.bf16.msra.mxu2 %v2034_v60  ;;  %2040 = vmatpush.bf16.msra.mxu3 %v2034_v60  ;;  %v798_v50 = vshrl.u32 %v1895_v40, 16 }
  0xf5   :  { %652 = vst.msk [vmem:[#allocation2 + $0x4] sm:$0xf] %vm650_vm7, %v605_v4  ;;  %v950_v11 = vpop.permute.xlu2 %949  ;;  %v1415_v4 = vrot.slane %v1413_v55, 4  ;;  %1620 = vmatpush.bf16.msra.mxu0 %v2034_v60  ;;  %2038 = vmatpush.bf16.msra.mxu1 %v2034_v60  ;;  %v1871_v55 = vld [vmem:[%s3128_s0 + $0x108] sm:$0xf] }
  0xf6   :  { %651 = vst.msk [vmem:[#allocation2] sm:$0xf] %vm650_vm7, %v603_v5  ;;  %v1418_v5 = vrot.slane %v1416_v56, 5  ;;  %v1377_v7 = vor.u32 %v1376_v58, %v1373_v57  ;;  %v751_v57 = vshll.u32 %v1888_v49, 16  ;;  %v800_v61 = vrot.slane %v798_v50, 4 }
  0xf8   :  { %v1419_v18 = vor.u32 %v1418_v5, %v1415_v4  ;;  %v1378_v20 = vrot.slane %v1377_v7, 4  ;;  %v753_v5 = vrot.slane %v751_v57, 5 }
  0xfa   :  { %943 = vrot.lane.b32.xlu1 %v852_v10, %s2086_s28  ;;  %632 = vrot.lane.b32.xlu0 %v1880_v12, %s2085_s29  ;;  %v2033_v10 = vld [vmem:[%s3129_s1] sm:$0xff]  ;;  %v1368_v12 = vrot.slane %v1366_v0, 5 }
  0xfb   :  { %945 = vrot.lane.b32.xlu2 %v866_v17, %s2086_s28  ;;  %v1436_v17 = vshll.u32 %v1976_v1, 16  ;;  %2042 = vmatpush.bf16.msra.mxu2 %v2033_v10 }
  0xfc   :  { %v619_v22 = vpop.permute.xlu1 %618  ;;  %v609_v23 = vpop.permute.xlu0 %608  ;;  %2043 = vmatpush.bf16.msra.mxu3 %v2033_v10  ;;  %1621 = vmatpush.bf16.msra.mxu0 %v2033_v10 }
  0xfd   :  { %659 = vst.msk [vmem:[#allocation2 + $0x20] sm:$0xf] %vm650_vm7, %v619_v22  ;;  %v1046_v24 = vpop.permute.xlu2 %1045  ;;  %v728_v22 = vshrl.u32 %v1885_v13, 16  ;;  %2041 = vmatpush.bf16.msra.mxu1 %v2033_v10 }
  0xfe   :  { %654 = vst.msk [vmem:[#allocation2 + $0xc] sm:$0xf] %vm650_vm7, %v609_v23  ;;  %v731_v23 = vshll.u32 %v1885_v13, 16 }
  0xff   :  { %980 = vst.msk [vmem:[#allocation2 + $0x20] sm:$0xf] %vm971_vm8, %v940_v51  ;;  %v1430_v51 = vshll.u32 %v1975_v39, 16  ;;  %v730_v34 = vrot.slane %v728_v22, 4 }
 0x100   :  { %v733_v35 = vrot.slane %v731_v23, 5  ;;  %v1915_v23 = vld [vmem:[%s3128_s0 + $0x18] sm:$0xf] }
 0x101   :  { %v1432_v3 = vrot.slane %v1430_v51, 5  ;;  %v801_v51 = vshll.u32 %v1895_v40, 16  ;;  %v1950_v40 = vld [vmem:[%s3128_s0 + $0x1c] sm:$0x1] }
 0x102   :  { %953 = vrot.lane.b32.xlu1 %v922_v25, %s2086_s28  ;;  %951 = vrot.lane.b32.xlu0 %v908_v26, %s2086_s28  ;;  %v1944_v26 = vld [vmem:[%s3128_s0 + $0x1a8] sm:$0xf]  ;;  %v734_v46 = vor.u32 %v733_v35, %v730_v34  ;;  %v1916_v34 = vld [vmem:[%s3128_s0 + $0x20] sm:$0xf]  ;;  %v1254_v50 = vshll.u32 %v1950_v40, 16 }
 0x103   :  { %1041 = vrot.lane.b32.xlu2 %v1923_v27, %s2087_s13  ;;  %v1433_v16 = vor.u32 %v1432_v3, %v1429_v2  ;;  %v1896_v2 = vld [vmem:[%s3128_s0 + $0xcc] sm:$0x1]  ;;  %v1894_v3 = vld [vmem:[%s3128_s0 + $0xc4] sm:$0x1]  ;;  %v1920_v35 = vld [vmem:[%s3128_s0 + $0x40] sm:$0xf] }
 0x104   :  { %v629_v28 = vpop.permute.xlu1 %628  ;;  %v627_v29 = vpop.permute.xlu0 %626  ;;  %v735_v58 = vrot.slane %v734_v46, 4  ;;  %v807_v10 = vshll.u32 %v1896_v2, 16  ;;  %v1931_v46 = vld [vmem:[%s3128_s0 + $0x60] sm:$0xf] }
 0x105   :  { %664 = vst.msk [vmem:[#allocation2 + $0x34] sm:$0xf] %vm650_vm7, %v629_v28  ;;  %v2824_v33 = vpop.permute.xlu2 %1137  ;;  %v1434_v27 = vrot.slane %v1433_v16, 4  ;;  %v1438_v28 = vrot.slane %v1436_v17, 5 }
 0x106   :  { %663 = vst.msk [vmem:[#allocation2 + $0x30] sm:$0xf] %vm650_vm7, %v627_v29  ;;  %v1420_v29 = vrot.slane %v1419_v18, 4 }
 0x107   :  { %985 = vst.msk [vmem:[#allocation2 + $0x34] sm:$0xf] %vm971_vm8, %v950_v11  ;;  %v1364_v11 = vrot.slane %v1363_v63, 4  ;;  %v1439_v44 = vsel %vm2206_vm2, %v1434_v27, %v1438_v28 }
 0x108   :  { %v1425_v45 = vsel %vm2206_vm2, %v1420_v29, %v1424_v30 }
 0x109   :  { %v1369_v25 = vsel %vm2206_vm2, %v1364_v11, %v1368_v12  ;;  %v793_v12 = vshll.u32 %v1894_v3, 16 }
 0x10a   :  { %1049 = vrot.lane.b32.xlu1 %v1927_v31, %s2087_s13  ;;  %1043 = vrot.lane.b32.xlu0 %v1924_v32, %s2087_s13  ;;  %v1383_v31 = vsel %vm2206_vm2, %v1378_v20, %v1382_v21  ;;  %v1887_v32 = vld [vmem:[%s3128_s0 + $0xa8] sm:$0xf] }
 0x10b   :  { %1051 = vrot.lane.b32.xlu2 %v1928_v38, %s2087_s13  ;;  %v745_v36 = vshll.u32 %v1887_v32, 16  ;;  %v795_v17 = vrot.slane %v793_v12, 5 }
 0x10c   :  { %v948_v47 = vpop.permute.xlu1 %947  ;;  %v942_v48 = vpop.permute.xlu0 %941 }
 0x10d   :  { %984 = vst.msk [vmem:[#allocation2 + $0x30] sm:$0xf] %vm971_vm8, %v948_v47  ;;  %v2853_v59 = vpop.permute.xlu2 %1456  ;;  %v747_v43 = vrot.slane %v745_v36, 5  ;;  %v737_v47 = vshll.u32 %v1886_v37, 16 }
 0x10e   :  { %981 = vst.msk [vmem:[#allocation2 + $0x24] sm:$0xf] %vm971_vm8, %v942_v48 }
 0x10f   :  { %1082 = vst.msk [vmem:[#allocation2 + $0x30] sm:$0xf] %vm1069_vm10, %v1046_v24  ;;  %v739_v60 = vrot.slane %v737_v47, 5 }
 0x112   :  { %1141 = vrot.lane.b32.xlu1 %v1940_v54, %s2088_s4  ;;  %1139 = vrot.lane.b32.xlu0 %v1939_v62, %s2088_s4  ;;  %v787_v54 = vshll.u32 %v1893_v41, 16  ;;  %v786_v62 = vrot.slane %v784_v53, 4  ;;  %v1952_v53 = vld [vmem:[%s3128_s0 + $0x24] sm:$0x1] }
 0x113   :  { %1147 = vrot.lane.b32.xlu2 %v1943_v6, %s2088_s4  ;;  %v740_v6 = vsel %vm2206_vm2, %v735_v58, %v739_v60  ;;  %v1935_v58 = vld [vmem:[%s3128_s0 + $0x80] sm:$0xf] }
 0x114   :  { %v1040_v14 = vpop.permute.xlu1 %1039  ;;  %v1038_v15 = vpop.permute.xlu0 %1037  ;;  %v789_v63 = vrot.slane %v787_v54, 5 }
 0x115   :  { %1079 = vst.msk [vmem:[#allocation2 + $0x24] sm:$0xf] %vm1069_vm10, %v1040_v14  ;;  %v2885_v24 = vpop.permute.xlu2 %1466 }
 0x116   :  { %1078 = vst.msk [vmem:[#allocation2 + $0x20] sm:$0xf] %vm1069_vm10, %v1038_v15  ;;  %v790_v11 = vor.u32 %v789_v63, %v786_v62  ;;  %v809_v15 = vrot.slane %v807_v10, 5  ;;  %v1256_v62 = vrot.slane %v1254_v50, 5 }
 0x117   :  { %1177 = vst.msk [vmem:[#allocation2 + $0x24] sm:$0xf] %vm1167_vm11, %v2824_v33  ;;  %v742_v33 = vshrl.u32 %v1887_v32, 16  ;;  %v1919_v32 = vld [vmem:[%s3128_s0 + $0x38] sm:$0xf] }
 0x118   :  { %v791_v16 = vrot.slane %v790_v11, 4  ;;  %v1936_v11 = vld [vmem:[%s3128_s0 + $0x88] sm:$0xf] }
 0x119   :  { %v744_v42 = vrot.slane %v742_v33, 4  ;;  %v1951_v33 = vld [vmem:[%s3128_s0 + $0x20] sm:$0xf] }
 0x11a   :  { %1460 = vrot.lane.b32.xlu1 %v1369_v25, %s2089_s17  ;;  %1149 = vrot.lane.b32.xlu0 %v1944_v26, %s2088_s4  ;;  %v796_v22 = vsel %vm2206_vm2, %v791_v16, %v795_v17 }
 0x11b   :  { %1462 = vrot.lane.b32.xlu2 %v1383_v31, %s2089_s17  ;;  %v748_v56 = vor.u32 %v747_v43, %v744_v42  ;;  %v1959_v43 = vld [vmem:[%s3128_s0 + $0x40] sm:$0xf] }
 0x11c   :  { %v1136_v38 = vpop.permute.xlu1 %1135  ;;  %v1048_v39 = vpop.permute.xlu0 %1047  ;;  %v1315_v54 = vshrl.u32 %v1959_v43, 16 }
 0x11d   :  { %1176 = vst.msk [vmem:[#allocation2 + $0x20] sm:$0xf] %vm1167_vm11, %v1136_v38  ;;  %v924_v48 = vpop.permute.xlu2 %923  ;;  %v749_v4 = vrot.slane %v748_v56, 4  ;;  %v1259_v38 = vshrl.u32 %v1951_v33, 16 }
 0x11e   :  { %1083 = vst.msk [vmem:[#allocation2 + $0x34] sm:$0xf] %vm1069_vm10, %v1048_v39  ;;  %v1262_v39 = vshll.u32 %v1951_v33, 16  ;;  %v1317_v63 = vrot.slane %v1315_v54, 4 }
 0x11f   :  { %1497 = vst.msk [vmem:[#allocation2 + $0x20] sm:$0xf] %vm1488_vm12, %v2853_v59  ;;  %v803_v59 = vrot.slane %v801_v51, 5  ;;  %v754_v13 = vsel %vm2206_vm2, %v749_v4, %v753_v5  ;;  %v1261_v47 = vrot.slane %v1259_v38, 4  ;;  %v1960_v5 = vld [vmem:[%s3128_s0 + $0x44] sm:$0x1] }
 0x120   :  { %972 = vst.msk [vmem:[#allocation2] sm:$0xf] %vm971_vm8, %v924_v48  ;;  %v1264_v48 = vrot.slane %v1262_v39, 5 }
 0x121   :  { %v804_v9 = vor.u32 %v803_v59, %v800_v61  ;;  %v1268_v61 = vshll.u32 %v1952_v53, 16 }
 0x122   :  { %1470 = vrot.lane.b32.xlu1 %v1439_v44, %s2089_s17  ;;  %1468 = vrot.lane.b32.xlu0 %v1425_v45, %s2089_s17  ;;  %v1957_v44 = vld [vmem:[%s3128_s0 + $0x38] sm:$0xf]  ;;  %v1932_v45 = vld [vmem:[%s3128_s0 + $0x68] sm:$0xf]  ;;  %v1265_v60 = vor.u32 %v1264_v48, %v1261_v47 }
 0x123   :  { %614 = vrot.lane.b32.xlu2 %v1871_v55, %s2085_s29  ;;  %v805_v14 = vrot.slane %v804_v9, 4  ;;  %v1318_v55 = vshll.u32 %v1959_v43, 16  ;;  %v1301_v56 = vshrl.u32 %v1957_v44, 16  ;;  %v1304_v57 = vshll.u32 %v1957_v44, 16 }
 0x124   :  { %v1146_v0 = vpop.permute.xlu1 %1145  ;;  %v1144_v1 = vpop.permute.xlu0 %1143 }
 0x125   :  { %1181 = vst.msk [vmem:[#allocation2 + $0x34] sm:$0xf] %vm1167_vm11, %v1146_v0  ;;  %v934_v7 = vpop.permute.xlu2 %933  ;;  %v810_v21 = vsel %vm2206_vm2, %v805_v14, %v809_v15  ;;  %v1320_v0 = vrot.slane %v1318_v55, 5  ;;  %v1306_v2 = vrot.slane %v1304_v57, 5 }
 0x126   :  { %1180 = vst.msk [vmem:[#allocation2 + $0x30] sm:$0xf] %vm1167_vm11, %v1144_v1  ;;  %v1303_v1 = vrot.slane %v1301_v56, 4 }
 0x127   :  { %1502 = vst.msk [vmem:[#allocation2 + $0x34] sm:$0xf] %vm1488_vm12, %v2885_v24  ;;  %v1949_v24 = vld [vmem:[%s3128_s0 + $0x18] sm:$0xf]  ;;  %v1321_v12 = vor.u32 %v1320_v0, %v1317_v63 }
 0x128   :  { %v1245_v29 = vshrl.u32 %v1949_v24, 16  ;;  %v1248_v30 = vshll.u32 %v1949_v24, 16  ;;  %v1307_v14 = vor.u32 %v1306_v2, %v1303_v1 }
 0x129   :  { %v1322_v17 = vrot.slane %v1321_v12, 4 }
 0x12a   :  { %927 = vrot.lane.b32.xlu1 %v740_v6, %s2086_s28  ;;  %616 = vrot.lane.b32.xlu0 %v1872_v8, %s2085_s29  ;;  %v1247_v36 = vrot.slane %v1245_v29, 4  ;;  %v1250_v37 = vrot.slane %v1248_v30, 5  ;;  %v1958_v6 = vld [vmem:[%s3128_s0 + $0x3c] sm:$0x1]  ;;  %v1270_v8 = vrot.slane %v1268_v61, 5 }
 0x12b   :  { %929 = vrot.lane.b32.xlu2 %v754_v13, %s2086_s28  ;;  %v1324_v13 = vshll.u32 %v1960_v5, 16  ;;  %v1310_v15 = vshll.u32 %v1958_v6, 16 }
 0x12c   :  { %v1465_v18 = vpop.permute.xlu1 %1464  ;;  %v1459_v19 = vpop.permute.xlu0 %1458  ;;  %v1251_v49 = vor.u32 %v1250_v37, %v1247_v36 }
 0x12d   :  { %1501 = vst.msk [vmem:[#allocation2 + $0x30] sm:$0xf] %vm1488_vm12, %v1465_v18  ;;  %v1030_v20 = vpop.permute.xlu2 %1029  ;;  %v1326_v18 = vrot.slane %v1324_v13, 5 }
 0x12e   :  { %1498 = vst.msk [vmem:[#allocation2 + $0x24] sm:$0xf] %vm1488_vm12, %v1459_v19  ;;  %v1252_v59 = vrot.slane %v1251_v49, 4  ;;  %v1308_v19 = vrot.slane %v1307_v14, 4 }
 0x12f   :  { %v1327_v24 = vsel %vm2206_vm2, %v1322_v17, %v1326_v18 }
 0x130   :  { %v1257_v9 = vsel %vm2206_vm2, %v1252_v59, %v1256_v62  ;;  %v2090_v59 = vmov 0.0  }
 0x131   :  { %1715 = vst [vmem:[#allocation4 + $0x40] sm:$0x1] %v2090_v59 }
 0x132   :  { %937 = vrot.lane.b32.xlu1 %v810_v21, %s2086_s28  ;;  %935 = vrot.lane.b32.xlu0 %v796_v22, %s2086_s28  ;;  %1711 = vst [vmem:[#allocation4] sm:$0x1] %v2090_v59 }
 0x133   :  { %1025 = vrot.lane.b32.xlu2 %v1915_v23, %s2087_s13  ;;  %1712 = vst [vmem:[#allocation4 + $0x10] sm:$0x1] %v2090_v59 }
 0x134   :  { %v613_v25 = vpop.permute.xlu1 %612  ;;  %v611_v26 = vpop.permute.xlu0 %610  ;;  %v2031_v27 = vld [vmem:[#allocation2 + $0x30] sm:$0xff]  ;;  %1713 = vst [vmem:[#allocation4 + $0x20] sm:$0x1] %v2090_v59 }
 0x135   :  { %656 = vst.msk [vmem:[#allocation2 + $0x14] sm:$0xf] %vm650_vm7, %v613_v25  ;;  %v2029_v28 = vld [vmem:[#allocation2 + $0x20] sm:$0xff]  ;;  %2023 = vmatmul.msk.bf16.vlgmr.msra.gmra.mxu3 %vm1585_vm13, %v2031_v27  ;;  %v1122_v31 = vpop.permute.xlu2 %1121 }
 0x136   :  { %655 = vst.msk [vmem:[#allocation2 + $0x10] sm:$0xf] %vm650_vm7, %v611_v26  ;;  %2021 = vmatmul.msk.bf16.vlgmr.msra.gmra.mxu2 %vm1585_vm13, %v2029_v28 }
 0x137   :  { %977 = vst.msk [vmem:[#allocation2 + $0x14] sm:$0xf] %vm971_vm8, %v934_v7  ;;  %v1266_v7 = vrot.slane %v1265_v60, 4 }
 0x138   :  { %1714 = vst [vmem:[#allocation4 + $0x30] sm:$0x1] %v2090_v59 }
 0x139   :  { %v1271_v16 = vsel %vm2206_vm2, %v1266_v7, %v1270_v8  ;;  %1716 = vst [vmem:[#allocation4 + $0x50] sm:$0x1] %v2090_v59  ;;  %v3085_v7 = vld [vmem:[%s3130_s2] ss:$0 sm:$0xff]  ;;  %s2091_s2 = smov [#allocation5]  }
 0x13a   :  { %1033 = vrot.lane.b32.xlu1 %v1919_v32, %s2087_s13  ;;  %1027 = vrot.lane.b32.xlu0 %v1916_v34, %s2087_s13  ;;  %1717 = vst [vmem:[#allocation4 + $0x60] sm:$0x1] %v2090_v59 }
 0x13b   :  { %1035 = vrot.lane.b32.xlu2 %v1920_v35, %s2087_s13  ;;  %1718 = vst [vmem:[#allocation4 + $0x70] sm:$0x1] %v2090_v59 }
 0x13c   :  { %v932_v41 = vpop.permute.xlu1 %931  ;;  %v926_v42 = vpop.permute.xlu0 %925 }
 0x13d   :  { %976 = vst.msk [vmem:[#allocation2 + $0x10] sm:$0xf] %vm971_vm8, %v932_v41  ;;  %v1441_v51 = vpop.permute.xlu2 %1440 }
 0x13e   :  { %973 = vst.msk [vmem:[#allocation2 + $0x4] sm:$0xf] %vm971_vm8, %v926_v42 }
 0x13f   :  { %1074 = vst.msk [vmem:[#allocation2 + $0x10] sm:$0xf] %vm1069_vm10, %v1030_v20  ;;  %v1312_v20 = vrot.slane %v1310_v15, 5 }
 0x141   :  { %v1313_v25 = vsel %vm2206_vm2, %v1308_v19, %v1312_v20 }
 0x142   :  { %1125 = vrot.lane.b32.xlu1 %v1932_v45, %s2088_s4  ;;  %1123 = vrot.lane.b32.xlu0 %v1931_v46, %s2088_s4 }
 0x143   :  { %1131 = vrot.lane.b32.xlu2 %v1935_v58, %s2088_s4 }
 0x144   :  { %v1024_v3 = vpop.permute.xlu1 %1023  ;;  %v1022_v4 = vpop.permute.xlu0 %1021 }
 0x145   :  { %1071 = vst.msk [vmem:[#allocation2 + $0x4] sm:$0xf] %vm1069_vm10, %v1024_v3  ;;  %v1451_v10 = vpop.permute.xlu2 %1450 }
 0x146   :  { %1070 = vst.msk [vmem:[#allocation2] sm:$0xf] %vm1069_vm10, %v1022_v4 }
 0x147   :  { %1169 = vst.msk [vmem:[#allocation2 + $0x4] sm:$0xf] %vm1167_vm11, %v1122_v31 }
 0x14a   :  { %1444 = vrot.lane.b32.xlu1 %v1257_v9, %s2089_s17  ;;  %1133 = vrot.lane.b32.xlu0 %v1936_v11, %s2088_s4 }
 0x14b   :  { %1446 = vrot.lane.b32.xlu2 %v1271_v16, %s2089_s17 }
 0x14c   :  { %v1120_v21 = vpop.permute.xlu1 %1119  ;;  %v1032_v22 = vpop.permute.xlu0 %1031 }
 0x14d   :  { %1168 = vst.msk [vmem:[#allocation2] sm:$0xf] %vm1167_vm11, %v1120_v21  ;;  %v631_v23 = vpop.permute.xlu2 %630 }
 0x14e   :  { %1075 = vst.msk [vmem:[#allocation2 + $0x14] sm:$0xf] %vm1069_vm10, %v1032_v22 }
 0x14f   :  { %1489 = vst.msk [vmem:[#allocation2] sm:$0xf] %vm1488_vm12, %v1441_v51 }
 0x150   :  { %665 = vst.msk [vmem:[#allocation2 + $0x38] sm:$0xf] %vm650_vm7, %v631_v23 }
 0x152   :  { %1454 = vrot.lane.b32.xlu1 %v1327_v24, %s2089_s17  ;;  %1452 = vrot.lane.b32.xlu0 %v1313_v25, %s2089_s17  ;;  %s1819_s17 = sshll.u32 %s2091_s2, 4  ;;  %s1820_s17 = int_to_ptr.vmem [resolvable:$true] %s1819_s17 }
 0x154   :  { %v1130_v26 = vpop.permute.xlu1 %1129  ;;  %v1128_v27 = vpop.permute.xlu0 %1127 }
 0x155   :  { %1173 = vst.msk [vmem:[#allocation2 + $0x14] sm:$0xf] %vm1167_vm11, %v1130_v26  ;;  %v946_v28 = vpop.permute.xlu2 %945 }
 0x156   :  { %1172 = vst.msk [vmem:[#allocation2 + $0x10] sm:$0xf] %vm1167_vm11, %v1128_v27 }
 0x157   :  { %1494 = vst.msk [vmem:[#allocation2 + $0x14] sm:$0xf] %vm1488_vm12, %v1451_v10 }
 0x15c   :  { %v1449_v29 = vpop.permute.xlu1 %1448  ;;  %v1443_v52 = vpop.permute.xlu0 %1442 }
 0x15d   :  { %1493 = vst.msk [vmem:[#allocation2 + $0x10] sm:$0xf] %vm1488_vm12, %v1449_v29  ;;  %v1042_v30 = vpop.permute.xlu2 %1041 }
 0x15e   :  { %1490 = vst.msk [vmem:[#allocation2 + $0x4] sm:$0xf] %vm1488_vm12, %v1443_v52 }
 0x164   :  { %v625_v31 = vpop.permute.xlu1 %624  ;;  %v623_v32 = vpop.permute.xlu0 %622  ;;  %v2027_v34 = vld [vmem:[#allocation2 + $0x10] sm:$0xff] }
 0x165   :  { %662 = vst.msk [vmem:[#allocation2 + $0x2c] sm:$0xf] %vm650_vm7, %v625_v31  ;;  %v2025_v35 = vld [vmem:[#allocation2] sm:$0xff]  ;;  %2019 = vmatmul.msk.bf16.vlgmr.msra.gmra.mxu1 %vm1585_vm13, %v2027_v34  ;;  %v1052_v33 = vpop.permute.xlu2 %1051 }
 0x166   :  { %661 = vst.msk [vmem:[#allocation2 + $0x28] sm:$0xf] %vm650_vm7, %v623_v32  ;;  %2017 = vmatmul.msk.bf16.vlgmr.msra.gmra.mxu0 %vm1585_vm13, %v2025_v35 }
 0x167   :  { %983 = vst.msk [vmem:[#allocation2 + $0x2c] sm:$0xf] %vm971_vm8, %v946_v28 }
 0x16c   :  { %v944_v36 = vpop.permute.xlu1 %943  ;;  %v633_v37 = vpop.permute.xlu0 %632 }
 0x16d   :  { %982 = vst.msk [vmem:[#allocation2 + $0x28] sm:$0xf] %vm971_vm8, %v944_v36  ;;  %v1148_v38 = vpop.permute.xlu2 %1147 }
 0x16e   :  { %666 = vst.msk [vmem:[#allocation2 + $0x3c] sm:$0xf] %vm650_vm7, %v633_v37 }
 0x16f   :  { %1080 = vst.msk [vmem:[#allocation2 + $0x28] sm:$0xf] %vm1069_vm10, %v1042_v30 }
 0x174   :  { %v954_v39 = vpop.permute.xlu1 %953  ;;  %v952_v40 = vpop.permute.xlu0 %951 }
 0x175   :  { %987 = vst.msk [vmem:[#allocation2 + $0x3c] sm:$0xf] %vm971_vm8, %v954_v39  ;;  %v1463_v41 = vpop.permute.xlu2 %1462 }
 0x176   :  { %986 = vst.msk [vmem:[#allocation2 + $0x38] sm:$0xf] %vm971_vm8, %v952_v40 }
 0x177   :  { %1085 = vst.msk [vmem:[#allocation2 + $0x3c] sm:$0xf] %vm1069_vm10, %v1052_v33 }
 0x17c   :  { %v1050_v42 = vpop.permute.xlu1 %1049  ;;  %v1044_v43 = vpop.permute.xlu0 %1043 }
 0x17d   :  { %1084 = vst.msk [vmem:[#allocation2 + $0x38] sm:$0xf] %vm1069_vm10, %v1050_v42  ;;  %v615_v44 = vpop.permute.xlu2 %614 }
 0x17e   :  { %1081 = vst.msk [vmem:[#allocation2 + $0x2c] sm:$0xf] %vm1069_vm10, %v1044_v43 }
 0x17f   :  { %1182 = vst.msk [vmem:[#allocation2 + $0x38] sm:$0xf] %vm1167_vm11, %v1148_v38 }
 0x180   :  { %657 = vst.msk [vmem:[#allocation2 + $0x18] sm:$0xf] %vm650_vm7, %v615_v44 }
 0x184   :  { %v1142_v45 = vpop.permute.xlu1 %1141  ;;  %v1140_v46 = vpop.permute.xlu0 %1139 }
 0x185   :  { %1179 = vst.msk [vmem:[#allocation2 + $0x2c] sm:$0xf] %vm1167_vm11, %v1142_v45  ;;  %v930_v47 = vpop.permute.xlu2 %929 }
 0x186   :  { %1178 = vst.msk [vmem:[#allocation2 + $0x28] sm:$0xf] %vm1167_vm11, %v1140_v46 }
 0x187   :  { %1500 = vst.msk [vmem:[#allocation2 + $0x2c] sm:$0xf] %vm1488_vm12, %v1463_v41 }
 0x188   :  { %975 = vst.msk [vmem:[#allocation2 + $0xc] sm:$0xf] %vm971_vm8, %v930_v47 }
 0x18c   :  { %v1461_v48 = vpop.permute.xlu1 %1460  ;;  %v1150_v49 = vpop.permute.xlu0 %1149 }
 0x18d   :  { %1499 = vst.msk [vmem:[#allocation2 + $0x28] sm:$0xf] %vm1488_vm12, %v1461_v48  ;;  %v1026_v54 = vpop.permute.xlu2 %1025 }
 0x18e   :  { %1183 = vst.msk [vmem:[#allocation2 + $0x3c] sm:$0xf] %vm1167_vm11, %v1150_v49 }
 0x194   :  { %v1471_v50 = vpop.permute.xlu1 %1470  ;;  %v1469_v51 = vpop.permute.xlu0 %1468  ;;  %v2030_v53 = vld [vmem:[#allocation2 + $0x28] sm:$0xff] }
 0x195   :  { %1504 = vst.msk [vmem:[#allocation2 + $0x3c] sm:$0xf] %vm1488_vm12, %v1471_v50  ;;  %2022 = vmatmul.msk.bf16.gmra.mxu2 %vm1585_vm13, %v2030_v53  ;;  %v1036_v58 = vpop.permute.xlu2 %1035 }
 0x196   :  { %1503 = vst.msk [vmem:[#allocation2 + $0x38] sm:$0xf] %vm1488_vm12, %v1469_v51 }
 0x19c   :  { %v928_v55 = vpop.permute.xlu1 %927  ;;  %v617_v56 = vpop.permute.xlu0 %616 }
 0x19d   :  { %974 = vst.msk [vmem:[#allocation2 + $0x8] sm:$0xf] %vm971_vm8, %v928_v55  ;;  %v2032_v57 = vld [vmem:[#allocation2 + $0x38] sm:$0xff]  ;;  %v1132_v62 = vpop.permute.xlu2 %1131 }
 0x19e   :  { %658 = vst.msk [vmem:[#allocation2 + $0x1c] sm:$0xf] %vm650_vm7, %v617_v56  ;;  %2024 = vmatmul.msk.bf16.gmra.mxu3 %vm1585_vm13, %v2032_v57 }
 0x19f   :  { %1072 = vst.msk [vmem:[#allocation2 + $0x8] sm:$0xf] %vm1069_vm10, %v1026_v54 }
 0x1a4   :  { %v938_v60 = vpop.permute.xlu1 %937  ;;  %v936_v61 = vpop.permute.xlu0 %935 }
 0x1a5   :  { %979 = vst.msk [vmem:[#allocation2 + $0x1c] sm:$0xf] %vm971_vm8, %v938_v60  ;;  %v1447_v1 = vpop.permute.xlu2 %1446 }
 0x1a6   :  { %978 = vst.msk [vmem:[#allocation2 + $0x18] sm:$0xf] %vm971_vm8, %v936_v61 }
 0x1a7   :  { %1077 = vst.msk [vmem:[#allocation2 + $0x1c] sm:$0xf] %vm1069_vm10, %v1036_v58 }
 0x1ac   :  { %v1034_v63 = vpop.permute.xlu1 %1033  ;;  %v1028_v0 = vpop.permute.xlu0 %1027 }
 0x1ad   :  { %1076 = vst.msk [vmem:[#allocation2 + $0x18] sm:$0xf] %vm1069_vm10, %v1034_v63 }
 0x1ae   :  { %1073 = vst.msk [vmem:[#allocation2 + $0xc] sm:$0xf] %vm1069_vm10, %v1028_v0 }
 0x1af   :  { %1174 = vst.msk [vmem:[#allocation2 + $0x18] sm:$0xf] %vm1167_vm11, %v1132_v62 }
 0x1b4   :  { %v1126_v2 = vpop.permute.xlu1 %1125  ;;  %v1124_v3 = vpop.permute.xlu0 %1123 }
 0x1b5   :  { %1171 = vst.msk [vmem:[#allocation2 + $0xc] sm:$0xf] %vm1167_vm11, %v1126_v2 }
 0x1b6   :  { %1170 = vst.msk [vmem:[#allocation2 + $0x8] sm:$0xf] %vm1167_vm11, %v1124_v3 }
 0x1b7   :  { %1492 = vst.msk [vmem:[#allocation2 + $0xc] sm:$0xf] %vm1488_vm12, %v1447_v1 }
 0x1b8   :  { %v1653_v36 = vpop.f32.mrf.mxu3 }
 0x1b9   :  { %v1643_v4 = vpop.f32.mrf.mxu2  ;;  %v1654_v40 = vadd.f32 %v3085_v7, %v1653_v36 }
 0x1ba   :  { %v1644_v8 = vadd.f32 %v3085_v7, %v1643_v4 }
 0x1bb   :  { %v1675_v44 = vmax.f32 %v1654_v40, 0.0 }
 0x1bc   :  { %v1445_v5 = vpop.permute.xlu1 %1444  ;;  %v1134_v6 = vpop.permute.xlu0 %1133  ;;  %v1671_v14 = vmax.f32 %v1644_v8, 0.0 }
 0x1bd   :  { %1491 = vst.msk [vmem:[#allocation2 + $0x8] sm:$0xf] %vm1488_vm12, %v1445_v5 }
 0x1be   :  { %1175 = vst.msk [vmem:[#allocation2 + $0x1c] sm:$0xf] %vm1167_vm11, %v1134_v6 }
 0x1c0   :  { %v1655_v37 = vpop.f32.mrf.mxu3 }
 0x1c1   :  { %v1645_v9 = vpop.f32.mrf.mxu2  ;;  %v1656_v39 = vadd.f32 %v3085_v7, %v1655_v37 }
 0x1c2   :  { %v1646_v10 = vadd.f32 %v3085_v7, %v1645_v9 }
 0x1c3   :  { %v1676_v41 = vmax.f32 %v1656_v39, 0.0 }
 0x1c4   :  { %v1455_v11 = vpop.permute.xlu1 %1454  ;;  %v1453_v12 = vpop.permute.xlu0 %1452  ;;  %v2026_v13 = vld [vmem:[#allocation2 + $0x8] sm:$0xff]  ;;  %v1672_v15 = vmax.f32 %v1646_v10, 0.0 }
 0x1c5   :  { %1496 = vst.msk [vmem:[#allocation2 + $0x1c] sm:$0xf] %vm1488_vm12, %v1455_v11  ;;  %2018 = vmatmul.msk.bf16.gmra.mxu0 %vm1585_vm13, %v2026_v13  ;;  %v1725_v47 = vmax.f32 %v1675_v44, %v1676_v41 }
 0x1c6   :  { %1495 = vst.msk [vmem:[#allocation2 + $0x18] sm:$0xf] %vm1488_vm12, %v1453_v12  ;;  %v1723_v16 = vmax.f32 %v1671_v14, %v1672_v15 }
 0x1c8   :  { %v1731_v17 = vmax.f32 %v1723_v16, 0.0 }
 0x1ca   :  { %1739 = vst [vmem:[#allocation4 + $0x41] sm:$0xff] %v1731_v17 }
 0x1cd   :  { %v2028_v18 = vld [vmem:[#allocation2 + $0x18] sm:$0xff] }
 0x1ce   :  { %2020 = vmatmul.msk.bf16.gmra.mxu1 %vm1585_vm13, %v2028_v18 }
 0x1d1   :  { %v1767_v19 = vld [vmem:[#allocation4 + $0x41] ss:$2 sm:$0xf]  ;;  %v1783_v20 = vld [vmem:[#allocation4 + $0x42] ss:$2 sm:$0xf] }
 0x1d2   :  { %v1794_v21 = vmax.f32 %v1767_v19, %v1783_v20  ;;  %v1751_v22 = vld [vmem:[#allocation4 + $0x40] ss:$2 sm:$0xf] }
 0x1d4   :  { %v1802_v23 = vmax.f32 %v1794_v21, %v1751_v22 }
 0x1d6   :  { %1811 = vst.msk [vmem:[#allocation5 + $0x10] sm:$0xf] %vm1806_vm14, %v1802_v23 }
 0x1e2   :  { %v1633_v8 = vpop.f32.mrf.mxu1 }
 0x1e3   :  { %v1623_v24 = vpop.f32.mrf.mxu0  ;;  %v1634_v17 = vadd.f32 %v3085_v7, %v1633_v8 }
 0x1e4   :  { %v1624_v25 = vadd.f32 %v3085_v7, %v1623_v24 }
 0x1e5   :  { %v1667_v21 = vmax.f32 %v1634_v17, 0.0 }
 0x1e6   :  { %v1663_v28 = vmax.f32 %v1624_v25, 0.0 }
 0x1ea   :  { %v1635_v14 = vpop.f32.mrf.mxu1 }
 0x1eb   :  { %v1625_v26 = vpop.f32.mrf.mxu0  ;;  %v1636_v16 = vadd.f32 %v3085_v7, %v1635_v14 }
 0x1ec   :  { %v3098_v27 = vadd.f32 %v3085_v7, %v1625_v26 }
 0x1ed   :  { %v1668_v18 = vmax.f32 %v1636_v16, 0.0 }
 0x1ee   :  { %v1664_v29 = vmax.f32 %v3098_v27, 0.0 }
 0x1ef   :  { %v1721_v24 = vmax.f32 %v1667_v21, %v1668_v18 }
 0x1f0   :  { %v1719_v52 = vmax.f32 %v1663_v28, %v1664_v29 }
 0x1f2   :  { %v1727_v30 = vmax.f32 %v1719_v52, 0.0 }
 0x1f4   :  { %1735 = vst [vmem:[#allocation4 + $0x1] sm:$0xff] %v1727_v30 }
 0x1fb   :  { %v1759_v31 = vld [vmem:[#allocation4 + $0x1] ss:$2 sm:$0xf]  ;;  %v1775_v32 = vld [vmem:[#allocation4 + $0x2] ss:$2 sm:$0xf] }
 0x1fc   :  { %v1790_v34 = vmax.f32 %v1759_v31, %v1775_v32  ;;  %v1743_v35 = vld [vmem:[#allocation4] ss:$2 sm:$0xf] }
 0x1fe   :  { %v1798_v33 = vmax.f32 %v1790_v34, %v1743_v35 }
 0x200   :  { %1807 = vst.msk [vmem:[#allocation5] sm:$0xf] %vm1806_vm14, %v1798_v33 }
 0x218   :  { %v1648_v38 = vpop.f32.mrf.mxu2 }
 0x219   :  { %v1649_v42 = vadd.f32 %v3085_v7, %v1648_v38 }
 0x21b   :  { %v1673_v48 = vmax.f32 %v1649_v42, 0.0 }
 0x220   :  { %v1650_v43 = vpop.f32.mrf.mxu2 }
 0x221   :  { %v1651_v45 = vadd.f32 %v3085_v7, %v1650_v43  ;;  %v1658_v46 = vpop.f32.mrf.mxu3 }
 0x222   :  { %v1659_v54 = vadd.f32 %v3085_v7, %v1658_v46 }
 0x223   :  { %v1674_v49 = vmax.f32 %v1651_v45, 0.0 }
 0x224   :  { %v1677_v57 = vmax.f32 %v1659_v54, 0.0 }
 0x225   :  { %v1724_v50 = vmax.f32 %v1673_v48, %v1674_v49  ;;  %v1733_v51 = vmax.f32 %v1725_v47, %v1674_v49 }
 0x227   :  { %v1732_v53 = vmax.f32 %v1724_v50, %v1672_v15  ;;  %1741 = vst [vmem:[#allocation4 + $0x61] sm:$0xff] %v1733_v51 }
 0x229   :  { %1740 = vst [vmem:[#allocation4 + $0x51] sm:$0xff] %v1732_v53  ;;  %v1660_v55 = vpop.f32.mrf.mxu3 }
 0x22a   :  { %v1661_v56 = vadd.f32 %v3085_v7, %v1660_v55 }
 0x22c   :  { %v1678_v58 = vmax.f32 %v1661_v56, 0.0 }
 0x22e   :  { %v1771_v60 = vld [vmem:[#allocation4 + $0x61] ss:$2 sm:$0xf]  ;;  %v1726_v61 = vmax.f32 %v1677_v57, %v1678_v58  ;;  %v1787_v59 = vld [vmem:[#allocation4 + $0x62] ss:$2 sm:$0xf] }
 0x22f   :  { %v1796_v63 = vmax.f32 %v1771_v60, %v1787_v59  ;;  %v1755_v1 = vld [vmem:[#allocation4 + $0x60] ss:$2 sm:$0xf] }
 0x230   :  { %v1769_v62 = vld [vmem:[#allocation4 + $0x51] ss:$2 sm:$0xf]  ;;  %v1734_v0 = vmax.f32 %v1726_v61, %v1676_v41  ;;  %v1785_v2 = vld [vmem:[#allocation4 + $0x52] ss:$2 sm:$0xf] }
 0x231   :  { %v1795_v3 = vmax.f32 %v1769_v62, %v1785_v2  ;;  %v1804_v4 = vmax.f32 %v1796_v63, %v1755_v1  ;;  %v1753_v5 = vld [vmem:[#allocation4 + $0x50] ss:$2 sm:$0xf] }
 0x232   :  { %1742 = vst [vmem:[#allocation4 + $0x71] sm:$0xff] %v1734_v0 }
 0x233   :  { %v1803_v6 = vmax.f32 %v1795_v3, %v1753_v5  ;;  %1813 = vst.msk [vmem:[#allocation5 + $0x18] sm:$0xf] %vm1806_vm14, %v1804_v4 }
 0x235   :  { %1812 = vst.msk [vmem:[#allocation5 + $0x14] sm:$0xf] %vm1806_vm14, %v1803_v6 }
 0x239   :  { %v1773_v9 = vld [vmem:[#allocation4 + $0x71] ss:$2 sm:$0xf]  ;;  %v1789_v10 = vld [vmem:[#allocation4 + $0x72] ss:$2 sm:$0xf] }
 0x23a   :  { %v1797_v11 = vmax.f32 %v1773_v9, %v1789_v10  ;;  %v1757_v12 = vld [vmem:[#allocation4 + $0x70] ss:$2 sm:$0xf] }
 0x23c   :  { %v1805_v13 = vmax.f32 %v1797_v11, %v1757_v12 }
 0x23e   :  { %1814 = vst.msk [vmem:[#allocation5 + $0x1c] sm:$0xf] %vm1806_vm14, %v1805_v13 }
 0x242   :  { %v1628_v15 = vpop.f32.mrf.mxu0 }
 0x243   :  { %v1629_v19 = vadd.f32 %v3085_v7, %v1628_v15 }
 0x245   :  { %v1665_v25 = vmax.f32 %v1629_v19, 0.0 }
 0x24a   :  { %v1630_v20 = vpop.f32.mrf.mxu0 }
 0x24b   :  { %v1631_v22 = vadd.f32 %v3085_v7, %v1630_v20  ;;  %v1638_v23 = vpop.f32.mrf.mxu1 }
 0x24c   :  { %v1639_v31 = vadd.f32 %v3085_v7, %v1638_v23 }
 0x24d   :  { %v1666_v26 = vmax.f32 %v1631_v22, 0.0 }
 0x24e   :  { %v1669_v35 = vmax.f32 %v1639_v31, 0.0 }
 0x24f   :  { %v1720_v28 = vmax.f32 %v1665_v25, %v1666_v26  ;;  %v1729_v52 = vmax.f32 %v1721_v24, %v1666_v26 }
 0x251   :  { %v1728_v30 = vmax.f32 %v1720_v28, %v1664_v29  ;;  %1737 = vst [vmem:[#allocation4 + $0x21] sm:$0xff] %v1729_v52 }
 0x253   :  { %1736 = vst [vmem:[#allocation4 + $0x11] sm:$0xff] %v1728_v30  ;;  %v1640_v32 = vpop.f32.mrf.mxu1 }
 0x254   :  { %v1641_v34 = vadd.f32 %v3085_v7, %v1640_v32 }
 0x256   :  { %v1670_v33 = vmax.f32 %v1641_v34, 0.0 }
 0x258   :  { %v1763_v36 = vld [vmem:[#allocation4 + $0x21] ss:$2 sm:$0xf]  ;;  %v1722_v37 = vmax.f32 %v1669_v35, %v1670_v33  ;;  %v1779_v38 = vld [vmem:[#allocation4 + $0x22] ss:$2 sm:$0xf] }
 0x259   :  { %v1792_v40 = vmax.f32 %v1763_v36, %v1779_v38  ;;  %v1747_v42 = vld [vmem:[#allocation4 + $0x20] ss:$2 sm:$0xf] }
 0x25a   :  { %v1761_v39 = vld [vmem:[#allocation4 + $0x11] ss:$2 sm:$0xf]  ;;  %v1730_v41 = vmax.f32 %v1722_v37, %v1668_v18  ;;  %v1777_v43 = vld [vmem:[#allocation4 + $0x12] ss:$2 sm:$0xf] }
 0x25b   :  { %v1791_v44 = vmax.f32 %v1761_v39, %v1777_v43  ;;  %v1800_v27 = vmax.f32 %v1792_v40, %v1747_v42  ;;  %v1745_v29 = vld [vmem:[#allocation4 + $0x10] ss:$2 sm:$0xf] }
 0x25c   :  { %1738 = vst [vmem:[#allocation4 + $0x31] sm:$0xff] %v1730_v41 }
 0x25d   :  { %v1799_v45 = vmax.f32 %v1791_v44, %v1745_v29  ;;  %1809 = vst.msk [vmem:[#allocation5 + $0x8] sm:$0xf] %vm1806_vm14, %v1800_v27 }
 0x25f   :  { %1808 = vst.msk [vmem:[#allocation5 + $0x4] sm:$0xf] %vm1806_vm14, %v1799_v45 }
 0x263   :  { %v1765_v7 = vld [vmem:[#allocation4 + $0x31] ss:$2 sm:$0xf]  ;;  %v1781_v46 = vld [vmem:[#allocation4 + $0x32] ss:$2 sm:$0xf] }
 0x264   :  { %v1793_v47 = vmax.f32 %v1765_v7, %v1781_v46  ;;  %v1749_v48 = vld [vmem:[#allocation4 + $0x30] ss:$2 sm:$0xf] }
 0x266   :  { %v1801_v49 = vmax.f32 %v1793_v47, %v1749_v48 }
 0x268   :  { %1810 = vst.msk [vmem:[#allocation5 + $0xc] sm:$0xf] %vm1806_vm14, %v1801_v49 }
 0x269   :  { %1827 = dma.vmem_to_hbm [thread:$0]  %s1820_s17, 512, %s1822_s5, [#allocation6], %s2092_s6, %s2092_s6, %s2082_s16  }
 0x26a   :  { %2080 = dma.done.wait [#allocation6], 512  }
 0x26b   :  { %2081 = vsyncadd [#allocation6], 4294966784 }
 0x26c   :  { %1832 = vsyncpa [#allocation6], 1 }

</bundles_post_ra>
